<compile_context>
chip_gen: v5e
topology: v5e:2x2
jax: 0.10.0
libtpu: 0.0.40
codegen_flags: <defaults>
</compile_context>

<pallas_src>
import jax
import jax.numpy as jnp
from jax import lax
from jax.experimental import pallas as pl
from jax.experimental.pallas import tpu as pltpu


# ----------------------------- config ---------------------------------------
NUM_EMBEDDING = 32
EMBEDDING_DIM = 16
ATTR_EMBEDDING_DIM = 8
HIDDEN_SIZE = 32
NUM_LAYER = 1
PAD = 0

INPUT_DIM = EMBEDDING_DIM + 2 * ATTR_EMBEDDING_DIM  # 32


# ----------------------------- fused Pallas kernel ---------------------------
def num_encoder_kernel(idt_ref, idw_ref, idg_ref, tab_ref, wf_ref, bf_ref,
                       whh_ref, bhh_ref, o_lin_ref, o_h_ref):
    # idt/idw/idg : [N, 1] int32 ids, already offset into the 3*NE class range
    # tab         : [3*NE, D]  block-diagonal embedding table (traj|weeki|gap)
    # wf          : [D, 4H]    fused weights  [W_line^T | W_ih_r^T | W_ih_z^T | W_ih_n^T]
    # bf          : [1, 4H]    fused biases   [b_line   | b_ih_r   | b_ih_z   | b_ih_n  ]
    # whh         : [3, H, H]  gate-major W_hh^T (r, z, n)
    # bhh         : [3, 1, H]  gate-major b_hh  (r, z, n)
    # o_lin       : [B, S, H]  embededsss
    # o_h         : [B, H]     final GRU hidden state
    B, S, H = o_lin_ref.shape
    N = B * S
    NE3 = tab_ref.shape[0]

    # ---- embedding gather as a one-hot matmul (no gather op, no concat) ----
    col = lax.broadcasted_iota(jnp.int32, (N, NE3), 1)
    one_hot = ((col == idt_ref[...]) |
               (col == idw_ref[...]) |
               (col == idg_ref[...])).astype(jnp.float32)          # [N, 3*NE]
    x = jnp.dot(one_hot, tab_ref[...],
                preferred_element_type=jnp.float32)                # [N, D]

    # ---- one lane-dense fused projection: Linear + all GRU input gates -----
    fused = jnp.dot(x, wf_ref[...],
                    preferred_element_type=jnp.float32) + bf_ref[...]  # [N, 4H]
    fused3 = fused.reshape(B, S, 4 * H)                            # batch-major

    o_lin_ref[...] = fused3[:, :, 0:H]                             # embededsss

    # Gates pre-split once, outside the recurrence (r, z, n).
    gi_r = fused3[:, :, H:2 * H]
    gi_z = fused3[:, :, 2 * H:3 * H]
    gi_n = fused3[:, :, 3 * H:4 * H]

    # Hoist weight/bias loads out of the loop; each is a lane-aligned [H,H]/[1,H].
    whh_r, whh_z, whh_n = whh_ref[0], whh_ref[1], whh_ref[2]
    bhh_r, bhh_z, bhh_n = bhh_ref[0], bhh_ref[1], bhh_ref[2]

    # ---- GRU recurrence: statically unrolled, hidden state stays in vregs --
    h = jnp.zeros((B, H), jnp.float32)
    for t in range(S):
        h_r = jnp.dot(h, whh_r, preferred_element_type=jnp.float32) + bhh_r
        h_z = jnp.dot(h, whh_z, preferred_element_type=jnp.float32) + bhh_z
        h_n = jnp.dot(h, whh_n, preferred_element_type=jnp.float32) + bhh_n
        r = jax.nn.sigmoid(gi_r[:, t, :] + h_r)
        z = jax.nn.sigmoid(gi_z[:, t, :] + h_z)
        n = jnp.tanh(gi_n[:, t, :] + r * h_n)
        h = (1.0 - z) * n + z * h

    o_h_ref[...] = h


def num_encoder_pallas(ids_t, ids_w, ids_g, table, w_fused, b_fused, whh, bhh,
                       B, S):
    H = whh.shape[-1]
    vmem = pl.BlockSpec(memory_space=pltpu.MemorySpace.VMEM)
    return pl.pallas_call(
        num_encoder_kernel,
        out_shape=(jax.ShapeDtypeStruct((B, S, H), jnp.float32),
                   jax.ShapeDtypeStruct((B, H), jnp.float32)),
        in_specs=[vmem] * 8,
        out_specs=(vmem, vmem),
    )(ids_t, ids_w, ids_g, table, w_fused, b_fused, whh, bhh)


# ----------------------------- parameter init --------------------------------
def init_params(key):
    """Parameters in PyTorch layouts (for the reference path)."""
    ks = jax.random.split(key, 8)
    scale = 0.1
    emb_traj = scale * jax.random.normal(
        ks[0], (NUM_EMBEDDING, EMBEDDING_DIM), jnp.float32)
    emb_traj = emb_traj.at[PAD].set(0.0)          # padding_idx=PAD -> zero row
    emb_weeki = scale * jax.random.normal(
        ks[1], (NUM_EMBEDDING, ATTR_EMBEDDING_DIM), jnp.float32)
    emb_gap = scale * jax.random.normal(
        ks[2], (NUM_EMBEDDING, ATTR_EMBEDDING_DIM), jnp.float32)

    # GRU layer 0 (PyTorch layout: weight_ih [3H, D], weight_hh [3H, H]; r|z|n)
    w_ih = scale * jax.random.normal(
        ks[3], (3 * HIDDEN_SIZE, INPUT_DIM), jnp.float32)
    w_hh = scale * jax.random.normal(
        ks[4], (3 * HIDDEN_SIZE, HIDDEN_SIZE), jnp.float32)
    b_ih = scale * jax.random.normal(ks[5], (3 * HIDDEN_SIZE,), jnp.float32)
    b_hh = scale * jax.random.normal(ks[6], (3 * HIDDEN_SIZE,), jnp.float32)

    # Linear: weight [H, D], bias [H]
    w_line = scale * jax.random.normal(
        ks[7], (HIDDEN_SIZE, INPUT_DIM), jnp.float32)
    b_line = jnp.zeros((HIDDEN_SIZE,), jnp.float32)

    return dict(emb_traj=emb_traj, emb_weeki=emb_weeki, emb_gap=emb_gap,
                w_ih=w_ih, w_hh=w_hh, b_ih=b_ih, b_hh=b_hh,
                w_line=w_line, b_line=b_line)


def pack_params(p):
    """One-time conversion to kernel-ready layouts (no per-call .T/.reshape)."""
    H, E, A, NE = HIDDEN_SIZE, EMBEDDING_DIM, ATTR_EMBEDDING_DIM, NUM_EMBEDDING

    # Block-diagonal embedding table: one-hot @ table == concat of 3 lookups.
    table = jnp.zeros((3 * NE, INPUT_DIM), jnp.float32)
    table = table.at[0:NE, 0:E].set(p["emb_traj"])
    table = table.at[NE:2 * NE, E:E + A].set(p["emb_weeki"])
    table = table.at[2 * NE:3 * NE, E + A:E + 2 * A].set(p["emb_gap"])

    # Fused [D, 4H] projection: Linear + GRU input gates (r, z, n).
    w_fused = jnp.concatenate([p["w_line"], p["w_ih"]], axis=0).T   # [D, 4H]
    b_fused = jnp.concatenate([p["b_line"], p["b_ih"]])[None, :]    # [1, 4H]

    # Gate-major recurrent weights/biases.
    whh = jnp.stack([p["w_hh"][g * H:(g + 1) * H, :].T for g in range(3)],
                    axis=0)                                         # [3, H, H]
    bhh = jnp.stack([p["b_hh"][g * H:(g + 1) * H][None, :] for g in range(3)],
                    axis=0)                                         # [3, 1, H]

    return dict(table=table, w_fused=w_fused, b_fused=b_fused, whh=whh, bhh=bhh)


# ----------------------------- forward ---------------------------------------
def num_encoder_forward(kparams, numpairs, attr):
    B, S = numpairs.shape
    N = B * S

    # Tiny int preprocessing (offsets the 3 id streams into one class range).
    ids_t = numpairs.reshape(N, 1).astype(jnp.int32)
    ids_w = (attr[:, :, 0].reshape(N, 1) + NUM_EMBEDDING).astype(jnp.int32)
    ids_g = (attr[:, :, 1].reshape(N, 1) + 2 * NUM_EMBEDDING).astype(jnp.int32)

    embededsss, h_last = num_encoder_pallas(
        ids_t, ids_w, ids_g,
        kparams["table"], kparams["w_fused"], kparams["b_fused"],
        kparams["whh"], kparams["bhh"], B, S)

    hidden = h_last[None, :, :]        # [num_layers=1, B, H] (PyTorch GRU hidden)
    return embededsss, hidden


# ----------------------------- pure-JAX reference -----------------------------
def reference_forward(p, numpairs, attr):
    H = HIDDEN_SIZE
    emb_traj = jnp.take(p["emb_traj"], numpairs, axis=0)
    emb_w = jnp.take(p["emb_weeki"], attr[:, :, 0], axis=0)
    emb_g = jnp.take(p["emb_gap"], attr[:, :, 1], axis=0)
    embeded = jnp.concatenate([emb_traj, emb_w, emb_g], axis=2)
    embededsss = embeded @ p["w_line"].T + p["b_line"]

    B = embeded.shape[0]

    def step(h, x_t):
        gi = x_t @ p["w_ih"].T + p["b_ih"]
        gh = h @ p["w_hh"].T + p["b_hh"]
        r = jax.nn.sigmoid(gi[:, :H] + gh[:, :H])
        z = jax.nn.sigmoid(gi[:, H:2 * H] + gh[:, H:2 * H])
        n = jnp.tanh(gi[:, 2 * H:] + r * gh[:, 2 * H:])
        return (1.0 - z) * n + z * h, None

    h0 = jnp.zeros((B, H), jnp.float32)
    h_last, _ = lax.scan(step, h0, jnp.transpose(embeded, (1, 0, 2)))
    return embededsss, h_last[None, :, :]


# ----------------------------- main -------------------------------------------
if __name__ == "__main__":
    key = jax.random.PRNGKey(0)
    pkey, ikey1, ikey2 = jax.random.split(key, 3)

    params = init_params(pkey)
    kparams = pack_params(params)          # kernel-ready layouts, packed once

    B, S = 2, 8
    numpairs = jax.random.randint(ikey1, (B, S), 0, NUM_EMBEDDING, dtype=jnp.int32)
    attr = jax.random.randint(ikey2, (B, S, 2), 0, NUM_EMBEDDING, dtype=jnp.int32)

    fwd = jax.jit(num_encoder_forward)
    embededsss, hidden = fwd(kparams, numpairs, attr)
    jax.block_until_ready((embededsss, hidden))

    assert embededsss.shape == (B, S, HIDDEN_SIZE)
    assert hidden.shape == (NUM_LAYER, B, HIDDEN_SIZE)

    # Loose-tolerance sanity check against a pure-JAX reference (MXU f32 paths
    # differ slightly in accumulation order/precision).
    ref_emb, ref_hid = reference_forward(params, numpairs, attr)
    assert jnp.allclose(embededsss, ref_emb, atol=1e-2, rtol=1e-2)
    assert jnp.allclose(hidden, ref_hid, atol=1e-2, rtol=1e-2)

    print("KERNEL_OK")
</pallas_src>

<mosaic_0001>
module attributes {stable_mosaic.version = 11 : i64} {
  func.func @num_encoder_kernel(%arg0: memref<16x1xi32, #tpu.memory_space<vmem>>, %arg1: memref<16x1xi32, #tpu.memory_space<vmem>>, %arg2: memref<16x1xi32, #tpu.memory_space<vmem>>, %arg3: memref<96x32xf32, #tpu.memory_space<vmem>>, %arg4: memref<32x128xf32, #tpu.memory_space<vmem>>, %arg5: memref<1x128xf32, #tpu.memory_space<vmem>>, %arg6: memref<3x32x32xf32, #tpu.memory_space<vmem>>, %arg7: memref<3x1x32xf32, #tpu.memory_space<vmem>>, %arg8: memref<2x8x32xf32, #tpu.memory_space<vmem>>, %arg9: memref<2x32xf32, #tpu.memory_space<vmem>>) attributes {dimension_semantics = [], scalar_prefetch = 0 : i64, scratch_operands = 0 : i64, tpu.core_type = #tpu.core_type<tc>} {
    %0 = tpu.iota {dimensions = array<i32: 1>} : vector<16x96xi32>
    %c0 = arith.constant 0 : index
    %c0_0 = arith.constant 0 : index
    %1 = vector.load %arg0[%c0, %c0_0] : memref<16x1xi32, #tpu.memory_space<vmem>>, vector<16x1xi32>
    %2 = vector.broadcast %1 : vector<16x1xi32> to vector<16x96xi32>
    %3 = arith.cmpi eq, %0, %2 : vector<16x96xi32>
    %c0_1 = arith.constant 0 : index
    %c0_2 = arith.constant 0 : index
    %4 = vector.load %arg1[%c0_1, %c0_2] : memref<16x1xi32, #tpu.memory_space<vmem>>, vector<16x1xi32>
    %5 = vector.broadcast %4 : vector<16x1xi32> to vector<16x96xi32>
    %6 = arith.cmpi eq, %0, %5 : vector<16x96xi32>
    %7 = arith.ori %3, %6 : vector<16x96xi1>
    %c0_3 = arith.constant 0 : index
    %c0_4 = arith.constant 0 : index
    %8 = vector.load %arg2[%c0_3, %c0_4] : memref<16x1xi32, #tpu.memory_space<vmem>>, vector<16x1xi32>
    %9 = vector.broadcast %8 : vector<16x1xi32> to vector<16x96xi32>
    %10 = arith.cmpi eq, %0, %9 : vector<16x96xi32>
    %11 = arith.ori %7, %10 : vector<16x96xi1>
    %12 = arith.extui %11 : vector<16x96xi1> to vector<16x96xi32>
    %13 = arith.sitofp %12 : vector<16x96xi32> to vector<16x96xf32>
    %c0_5 = arith.constant 0 : index
    %c0_6 = arith.constant 0 : index
    %14 = vector.load %arg3[%c0_5, %c0_6] : memref<96x32xf32, #tpu.memory_space<vmem>>, vector<96x32xf32>
    %cst = arith.constant dense<0.000000e+00> : vector<16x32xf32>
    %15 = tpu.matmul %13, %14, %cst {dimension_numbers = #tpu.dot_dimension_numbers<[1], [0], [0], [1], [0, 0, 1, 1], [], []>} : vector<16x96xf32>, vector<96x32xf32>, vector<16x32xf32> -> vector<16x32xf32>
    %c0_7 = arith.constant 0 : index
    %c0_8 = arith.constant 0 : index
    %16 = vector.load %arg4[%c0_7, %c0_8] : memref<32x128xf32, #tpu.memory_space<vmem>>, vector<32x128xf32>
    %cst_9 = arith.constant dense<0.000000e+00> : vector<16x128xf32>
    %17 = tpu.matmul %15, %16, %cst_9 {dimension_numbers = #tpu.dot_dimension_numbers<[1], [0], [0], [1], [0, 0, 1, 1], [], []>} : vector<16x32xf32>, vector<32x128xf32>, vector<16x128xf32> -> vector<16x128xf32>
    %c0_10 = arith.constant 0 : index
    %c0_11 = arith.constant 0 : index
    %18 = vector.load %arg5[%c0_10, %c0_11] : memref<1x128xf32, #tpu.memory_space<vmem>>, vector<1x128xf32>
    %19 = vector.broadcast %18 : vector<1x128xf32> to vector<16x128xf32>
    %20 = arith.addf %17, %19 : vector<16x128xf32>
    %21 = vector.shape_cast %20 : vector<16x128xf32> to vector<2x8x128xf32>
    %22 = vector.extract_strided_slice %21 {offsets = [0, 0, 0], sizes = [2, 8, 32], strides = [1, 1, 1]} : vector<2x8x128xf32> to vector<2x8x32xf32>
    %c0_12 = arith.constant 0 : index
    %c0_13 = arith.constant 0 : index
    %c0_14 = arith.constant 0 : index
    %23 = vector.load %arg8[%c0_12, %c0_13, %c0_14] : memref<2x8x32xf32, #tpu.memory_space<vmem>>, vector<2x8x32xf32>
    tpu.vector_store %arg8[%c0_12, %c0_13, %c0_14], %22 {strides = array<i32>} : memref<2x8x32xf32, #tpu.memory_space<vmem>>, vector<2x8x32xf32>,
    %24 = vector.extract_strided_slice %21 {offsets = [0, 0, 32], sizes = [2, 8, 32], strides = [1, 1, 1]} : vector<2x8x128xf32> to vector<2x8x32xf32>
    %25 = vector.extract_strided_slice %21 {offsets = [0, 0, 64], sizes = [2, 8, 32], strides = [1, 1, 1]} : vector<2x8x128xf32> to vector<2x8x32xf32>
    %26 = vector.extract_strided_slice %21 {offsets = [0, 0, 96], sizes = [2, 8, 32], strides = [1, 1, 1]} : vector<2x8x128xf32> to vector<2x8x32xf32>
    %c0_15 = arith.constant 0 : index
    %c0_16 = arith.constant 0 : index
    %c0_17 = arith.constant 0 : index
    %27 = vector.load %arg6[%c0_15, %c0_16, %c0_17] : memref<3x32x32xf32, #tpu.memory_space<vmem>>, vector<1x32x32xf32>
    %28 = vector.shape_cast %27 : vector<1x32x32xf32> to vector<32x32xf32>
    %c1 = arith.constant 1 : index
    %c0_18 = arith.constant 0 : index
    %c0_19 = arith.constant 0 : index
    %29 = vector.load %arg6[%c1, %c0_18, %c0_19] : memref<3x32x32xf32, #tpu.memory_space<vmem>>, vector<1x32x32xf32>
    %30 = vector.shape_cast %29 : vector<1x32x32xf32> to vector<32x32xf32>
    %c2 = arith.constant 2 : index
    %c0_20 = arith.constant 0 : index
    %c0_21 = arith.constant 0 : index
    %31 = vector.load %arg6[%c2, %c0_20, %c0_21] : memref<3x32x32xf32, #tpu.memory_space<vmem>>, vector<1x32x32xf32>
    %32 = vector.shape_cast %31 : vector<1x32x32xf32> to vector<32x32xf32>
    %c0_22 = arith.constant 0 : index
    %c0_23 = arith.constant 0 : index
    %c0_24 = arith.constant 0 : index
    %33 = vector.load %arg7[%c0_22, %c0_23, %c0_24] : memref<3x1x32xf32, #tpu.memory_space<vmem>>, vector<1x1x32xf32>
    %34 = vector.shape_cast %33 : vector<1x1x32xf32> to vector<1x32xf32>
    %c1_25 = arith.constant 1 : index
    %c0_26 = arith.constant 0 : index
    %c0_27 = arith.constant 0 : index
    %35 = vector.load %arg7[%c1_25, %c0_26, %c0_27] : memref<3x1x32xf32, #tpu.memory_space<vmem>>, vector<1x1x32xf32>
    %36 = vector.shape_cast %35 : vector<1x1x32xf32> to vector<1x32xf32>
    %c2_28 = arith.constant 2 : index
    %c0_29 = arith.constant 0 : index
    %c0_30 = arith.constant 0 : index
    %37 = vector.load %arg7[%c2_28, %c0_29, %c0_30] : memref<3x1x32xf32, #tpu.memory_space<vmem>>, vector<1x1x32xf32>
    %38 = vector.shape_cast %37 : vector<1x1x32xf32> to vector<1x32xf32>
    %cst_31 = arith.constant 0.000000e+00 : f32
    %39 = vector.broadcast %cst_31 : f32 to vector<2x32xf32>
    %cst_32 = arith.constant dense<0.000000e+00> : vector<2x32xf32>
    %40 = tpu.matmul %39, %28, %cst_32 {dimension_numbers = #tpu.dot_dimension_numbers<[1], [0], [0], [1], [0, 0, 1, 1], [], []>} : vector<2x32xf32>, vector<32x32xf32>, vector<2x32xf32> -> vector<2x32xf32>
    %41 = vector.broadcast %34 : vector<1x32xf32> to vector<2x32xf32>
    %42 = arith.addf %40, %41 : vector<2x32xf32>
    %cst_33 = arith.constant dense<0.000000e+00> : vector<2x32xf32>
    %43 = tpu.matmul %39, %30, %cst_33 {dimension_numbers = #tpu.dot_dimension_numbers<[1], [0], [0], [1], [0, 0, 1, 1], [], []>} : vector<2x32xf32>, vector<32x32xf32>, vector<2x32xf32> -> vector<2x32xf32>
    %44 = vector.broadcast %36 : vector<1x32xf32> to vector<2x32xf32>
    %45 = arith.addf %43, %44 : vector<2x32xf32>
    %cst_34 = arith.constant dense<0.000000e+00> : vector<2x32xf32>
    %46 = tpu.matmul %39, %32, %cst_34 {dimension_numbers = #tpu.dot_dimension_numbers<[1], [0], [0], [1], [0, 0, 1, 1], [], []>} : vector<2x32xf32>, vector<32x32xf32>, vector<2x32xf32> -> vector<2x32xf32>
    %47 = vector.broadcast %38 : vector<1x32xf32> to vector<2x32xf32>
    %48 = arith.addf %46, %47 : vector<2x32xf32>
    %49 = vector.extract_strided_slice %24 {offsets = [0, 0, 0], sizes = [2, 1, 32], strides = [1, 1, 1]} : vector<2x8x32xf32> to vector<2x1x32xf32>
    %50 = vector.shape_cast %49 : vector<2x1x32xf32> to vector<2x32xf32>
    %51 = arith.addf %50, %42 : vector<2x32xf32>
    %52 = arith.negf %51 : vector<2x32xf32>
    %53 = math.exp %52 : vector<2x32xf32>
    %cst_35 = arith.constant 1.000000e+00 : f32
    %54 = vector.broadcast %cst_35 : f32 to vector<2x32xf32>
    %55 = arith.addf %54, %53 : vector<2x32xf32>
    %56 = arith.divf %54, %55 : vector<2x32xf32>
    %57 = vector.extract_strided_slice %25 {offsets = [0, 0, 0], sizes = [2, 1, 32], strides = [1, 1, 1]} : vector<2x8x32xf32> to vector<2x1x32xf32>
    %58 = vector.shape_cast %57 : vector<2x1x32xf32> to vector<2x32xf32>
    %59 = arith.addf %58, %45 : vector<2x32xf32>
    %60 = arith.negf %59 : vector<2x32xf32>
    %61 = math.exp %60 : vector<2x32xf32>
    %cst_36 = arith.constant 1.000000e+00 : f32
    %62 = vector.broadcast %cst_36 : f32 to vector<2x32xf32>
    %63 = arith.addf %62, %61 : vector<2x32xf32>
    %64 = arith.divf %62, %63 : vector<2x32xf32>
    %65 = vector.extract_strided_slice %26 {offsets = [0, 0, 0], sizes = [2, 1, 32], strides = [1, 1, 1]} : vector<2x8x32xf32> to vector<2x1x32xf32>
    %66 = vector.shape_cast %65 : vector<2x1x32xf32> to vector<2x32xf32>
    %67 = arith.mulf %56, %48 : vector<2x32xf32>
    %68 = arith.addf %66, %67 : vector<2x32xf32>
    %69 = math.tanh %68 : vector<2x32xf32>
    %cst_37 = arith.constant 1.000000e+00 : f32
    %70 = vector.broadcast %cst_37 : f32 to vector<2x32xf32>
    %71 = arith.subf %70, %64 : vector<2x32xf32>
    %72 = arith.mulf %71, %69 : vector<2x32xf32>
    %73 = arith.mulf %64, %39 : vector<2x32xf32>
    %74 = arith.addf %72, %73 : vector<2x32xf32>
    %cst_38 = arith.constant dense<0.000000e+00> : vector<2x32xf32>
    %75 = tpu.matmul %74, %28, %cst_38 {dimension_numbers = #tpu.dot_dimension_numbers<[1], [0], [0], [1], [0, 0, 1, 1], [], []>} : vector<2x32xf32>, vector<32x32xf32>, vector<2x32xf32> -> vector<2x32xf32>
    %76 = vector.broadcast %34 : vector<1x32xf32> to vector<2x32xf32>
    %77 = arith.addf %75, %76 : vector<2x32xf32>
    %cst_39 = arith.constant dense<0.000000e+00> : vector<2x32xf32>
    %78 = tpu.matmul %74, %30, %cst_39 {dimension_numbers = #tpu.dot_dimension_numbers<[1], [0], [0], [1], [0, 0, 1, 1], [], []>} : vector<2x32xf32>, vector<32x32xf32>, vector<2x32xf32> -> vector<2x32xf32>
    %79 = vector.broadcast %36 : vector<1x32xf32> to vector<2x32xf32>
    %80 = arith.addf %78, %79 : vector<2x32xf32>
    %cst_40 = arith.constant dense<0.000000e+00> : vector<2x32xf32>
    %81 = tpu.matmul %74, %32, %cst_40 {dimension_numbers = #tpu.dot_dimension_numbers<[1], [0], [0], [1], [0, 0, 1, 1], [], []>} : vector<2x32xf32>, vector<32x32xf32>, vector<2x32xf32> -> vector<2x32xf32>
    %82 = vector.broadcast %38 : vector<1x32xf32> to vector<2x32xf32>
    %83 = arith.addf %81, %82 : vector<2x32xf32>
    %84 = vector.extract_strided_slice %24 {offsets = [0, 1, 0], sizes = [2, 1, 32], strides = [1, 1, 1]} : vector<2x8x32xf32> to vector<2x1x32xf32>
    %85 = vector.shape_cast %84 : vector<2x1x32xf32> to vector<2x32xf32>
    %86 = arith.addf %85, %77 : vector<2x32xf32>
    %87 = arith.negf %86 : vector<2x32xf32>
    %88 = math.exp %87 : vector<2x32xf32>
    %cst_41 = arith.constant 1.000000e+00 : f32
    %89 = vector.broadcast %cst_41 : f32 to vector<2x32xf32>
    %90 = arith.addf %89, %88 : vector<2x32xf32>
    %91 = arith.divf %89, %90 : vector<2x32xf32>
    %92 = vector.extract_strided_slice %25 {offsets = [0, 1, 0], sizes = [2, 1, 32], strides = [1, 1, 1]} : vector<2x8x32xf32> to vector<2x1x32xf32>
    %93 = vector.shape_cast %92 : vector<2x1x32xf32> to vector<2x32xf32>
    %94 = arith.addf %93, %80 : vector<2x32xf32>
    %95 = arith.negf %94 : vector<2x32xf32>
    %96 = math.exp %95 : vector<2x32xf32>
    %cst_42 = arith.constant 1.000000e+00 : f32
    %97 = vector.broadcast %cst_42 : f32 to vector<2x32xf32>
    %98 = arith.addf %97, %96 : vector<2x32xf32>
    %99 = arith.divf %97, %98 : vector<2x32xf32>
    %100 = vector.extract_strided_slice %26 {offsets = [0, 1, 0], sizes = [2, 1, 32], strides = [1, 1, 1]} : vector<2x8x32xf32> to vector<2x1x32xf32>
    %101 = vector.shape_cast %100 : vector<2x1x32xf32> to vector<2x32xf32>
    %102 = arith.mulf %91, %83 : vector<2x32xf32>
    %103 = arith.addf %101, %102 : vector<2x32xf32>
    %104 = math.tanh %103 : vector<2x32xf32>
    %cst_43 = arith.constant 1.000000e+00 : f32
    %105 = vector.broadcast %cst_43 : f32 to vector<2x32xf32>
    %106 = arith.subf %105, %99 : vector<2x32xf32>
    %107 = arith.mulf %106, %104 : vector<2x32xf32>
    %108 = arith.mulf %99, %74 : vector<2x32xf32>
    %109 = arith.addf %107, %108 : vector<2x32xf32>
    %cst_44 = arith.constant dense<0.000000e+00> : vector<2x32xf32>
    %110 = tpu.matmul %109, %28, %cst_44 {dimension_numbers = #tpu.dot_dimension_numbers<[1], [0], [0], [1], [0, 0, 1, 1], [], []>} : vector<2x32xf32>, vector<32x32xf32>, vector<2x32xf32> -> vector<2x32xf32>
    %111 = vector.broadcast %34 : vector<1x32xf32> to vector<2x32xf32>
    %112 = arith.addf %110, %111 : vector<2x32xf32>
    %cst_45 = arith.constant dense<0.000000e+00> : vector<2x32xf32>
    %113 = tpu.matmul %109, %30, %cst_45 {dimension_numbers = #tpu.dot_dimension_numbers<[1], [0], [0], [1], [0, 0, 1, 1], [], []>} : vector<2x32xf32>, vector<32x32xf32>, vector<2x32xf32> -> vector<2x32xf32>
    %114 = vector.broadcast %36 : vector<1x32xf32> to vector<2x32xf32>
    %115 = arith.addf %113, %114 : vector<2x32xf32>
    %cst_46 = arith.constant dense<0.000000e+00> : vector<2x32xf32>
    %116 = tpu.matmul %109, %32, %cst_46 {dimension_numbers = #tpu.dot_dimension_numbers<[1], [0], [0], [1], [0, 0, 1, 1], [], []>} : vector<2x32xf32>, vector<32x32xf32>, vector<2x32xf32> -> vector<2x32xf32>
    %117 = vector.broadcast %38 : vector<1x32xf32> to vector<2x32xf32>
    %118 = arith.addf %116, %117 : vector<2x32xf32>
    %119 = vector.extract_strided_slice %24 {offsets = [0, 2, 0], sizes = [2, 1, 32], strides = [1, 1, 1]} : vector<2x8x32xf32> to vector<2x1x32xf32>
    %120 = vector.shape_cast %119 : vector<2x1x32xf32> to vector<2x32xf32>
    %121 = arith.addf %120, %112 : vector<2x32xf32>
    %122 = arith.negf %121 : vector<2x32xf32>
    %123 = math.exp %122 : vector<2x32xf32>
    %cst_47 = arith.constant 1.000000e+00 : f32
    %124 = vector.broadcast %cst_47 : f32 to vector<2x32xf32>
    %125 = arith.addf %124, %123 : vector<2x32xf32>
    %126 = arith.divf %124, %125 : vector<2x32xf32>
    %127 = vector.extract_strided_slice %25 {offsets = [0, 2, 0], sizes = [2, 1, 32], strides = [1, 1, 1]} : vector<2x8x32xf32> to vector<2x1x32xf32>
    %128 = vector.shape_cast %127 : vector<2x1x32xf32> to vector<2x32xf32>
    %129 = arith.addf %128, %115 : vector<2x32xf32>
    %130 = arith.negf %129 : vector<2x32xf32>
    %131 = math.exp %130 : vector<2x32xf32>
    %cst_48 = arith.constant 1.000000e+00 : f32
    %132 = vector.broadcast %cst_48 : f32 to vector<2x32xf32>
    %133 = arith.addf %132, %131 : vector<2x32xf32>
    %134 = arith.divf %132, %133 : vector<2x32xf32>
    %135 = vector.extract_strided_slice %26 {offsets = [0, 2, 0], sizes = [2, 1, 32], strides = [1, 1, 1]} : vector<2x8x32xf32> to vector<2x1x32xf32>
    %136 = vector.shape_cast %135 : vector<2x1x32xf32> to vector<2x32xf32>
    %137 = arith.mulf %126, %118 : vector<2x32xf32>
    %138 = arith.addf %136, %137 : vector<2x32xf32>
    %139 = math.tanh %138 : vector<2x32xf32>
    %cst_49 = arith.constant 1.000000e+00 : f32
    %140 = vector.broadcast %cst_49 : f32 to vector<2x32xf32>
    %141 = arith.subf %140, %134 : vector<2x32xf32>
    %142 = arith.mulf %141, %139 : vector<2x32xf32>
    %143 = arith.mulf %134, %109 : vector<2x32xf32>
    %144 = arith.addf %142, %143 : vector<2x32xf32>
    %cst_50 = arith.constant dense<0.000000e+00> : vector<2x32xf32>
    %145 = tpu.matmul %144, %28, %cst_50 {dimension_numbers = #tpu.dot_dimension_numbers<[1], [0], [0], [1], [0, 0, 1, 1], [], []>} : vector<2x32xf32>, vector<32x32xf32>, vector<2x32xf32> -> vector<2x32xf32>
    %146 = vector.broadcast %34 : vector<1x32xf32> to vector<2x32xf32>
    %147 = arith.addf %145, %146 : vector<2x32xf32>
    %cst_51 = arith.constant dense<0.000000e+00> : vector<2x32xf32>
    %148 = tpu.matmul %144, %30, %cst_51 {dimension_numbers = #tpu.dot_dimension_numbers<[1], [0], [0], [1], [0, 0, 1, 1], [], []>} : vector<2x32xf32>, vector<32x32xf32>, vector<2x32xf32> -> vector<2x32xf32>
    %149 = vector.broadcast %36 : vector<1x32xf32> to vector<2x32xf32>
    %150 = arith.addf %148, %149 : vector<2x32xf32>
    %cst_52 = arith.constant dense<0.000000e+00> : vector<2x32xf32>
    %151 = tpu.matmul %144, %32, %cst_52 {dimension_numbers = #tpu.dot_dimension_numbers<[1], [0], [0], [1], [0, 0, 1, 1], [], []>} : vector<2x32xf32>, vector<32x32xf32>, vector<2x32xf32> -> vector<2x32xf32>
    %152 = vector.broadcast %38 : vector<1x32xf32> to vector<2x32xf32>
    %153 = arith.addf %151, %152 : vector<2x32xf32>
    %154 = vector.extract_strided_slice %24 {offsets = [0, 3, 0], sizes = [2, 1, 32], strides = [1, 1, 1]} : vector<2x8x32xf32> to vector<2x1x32xf32>
    %155 = vector.shape_cast %154 : vector<2x1x32xf32> to vector<2x32xf32>
    %156 = arith.addf %155, %147 : vector<2x32xf32>
    %157 = arith.negf %156 : vector<2x32xf32>
    %158 = math.exp %157 : vector<2x32xf32>
    %cst_53 = arith.constant 1.000000e+00 : f32
    %159 = vector.broadcast %cst_53 : f32 to vector<2x32xf32>
    %160 = arith.addf %159, %158 : vector<2x32xf32>
    %161 = arith.divf %159, %160 : vector<2x32xf32>
    %162 = vector.extract_strided_slice %25 {offsets = [0, 3, 0], sizes = [2, 1, 32], strides = [1, 1, 1]} : vector<2x8x32xf32> to vector<2x1x32xf32>
    %163 = vector.shape_cast %162 : vector<2x1x32xf32> to vector<2x32xf32>
    %164 = arith.addf %163, %150 : vector<2x32xf32>
    %165 = arith.negf %164 : vector<2x32xf32>
    %166 = math.exp %165 : vector<2x32xf32>
    %cst_54 = arith.constant 1.000000e+00 : f32
    %167 = vector.broadcast %cst_54 : f32 to vector<2x32xf32>
    %168 = arith.addf %167, %166 : vector<2x32xf32>
    %169 = arith.divf %167, %168 : vector<2x32xf32>
    %170 = vector.extract_strided_slice %26 {offsets = [0, 3, 0], sizes = [2, 1, 32], strides = [1, 1, 1]} : vector<2x8x32xf32> to vector<2x1x32xf32>
    %171 = vector.shape_cast %170 : vector<2x1x32xf32> to vector<2x32xf32>
    %172 = arith.mulf %161, %153 : vector<2x32xf32>
    %173 = arith.addf %171, %172 : vector<2x32xf32>
    %174 = math.tanh %173 : vector<2x32xf32>
    %cst_55 = arith.constant 1.000000e+00 : f32
    %175 = vector.broadcast %cst_55 : f32 to vector<2x32xf32>
    %176 = arith.subf %175, %169 : vector<2x32xf32>
    %177 = arith.mulf %176, %174 : vector<2x32xf32>
    %178 = arith.mulf %169, %144 : vector<2x32xf32>
    %179 = arith.addf %177, %178 : vector<2x32xf32>
    %cst_56 = arith.constant dense<0.000000e+00> : vector<2x32xf32>
    %180 = tpu.matmul %179, %28, %cst_56 {dimension_numbers = #tpu.dot_dimension_numbers<[1], [0], [0], [1], [0, 0, 1, 1], [], []>} : vector<2x32xf32>, vector<32x32xf32>, vector<2x32xf32> -> vector<2x32xf32>
    %181 = vector.broadcast %34 : vector<1x32xf32> to vector<2x32xf32>
    %182 = arith.addf %180, %181 : vector<2x32xf32>
    %cst_57 = arith.constant dense<0.000000e+00> : vector<2x32xf32>
    %183 = tpu.matmul %179, %30, %cst_57 {dimension_numbers = #tpu.dot_dimension_numbers<[1], [0], [0], [1], [0, 0, 1, 1], [], []>} : vector<2x32xf32>, vector<32x32xf32>, vector<2x32xf32> -> vector<2x32xf32>
    %184 = vector.broadcast %36 : vector<1x32xf32> to vector<2x32xf32>
    %185 = arith.addf %183, %184 : vector<2x32xf32>
    %cst_58 = arith.constant dense<0.000000e+00> : vector<2x32xf32>
    %186 = tpu.matmul %179, %32, %cst_58 {dimension_numbers = #tpu.dot_dimension_numbers<[1], [0], [0], [1], [0, 0, 1, 1], [], []>} : vector<2x32xf32>, vector<32x32xf32>, vector<2x32xf32> -> vector<2x32xf32>
    %187 = vector.broadcast %38 : vector<1x32xf32> to vector<2x32xf32>
    %188 = arith.addf %186, %187 : vector<2x32xf32>
    %189 = vector.extract_strided_slice %24 {offsets = [0, 4, 0], sizes = [2, 1, 32], strides = [1, 1, 1]} : vector<2x8x32xf32> to vector<2x1x32xf32>
    %190 = vector.shape_cast %189 : vector<2x1x32xf32> to vector<2x32xf32>
    %191 = arith.addf %190, %182 : vector<2x32xf32>
    %192 = arith.negf %191 : vector<2x32xf32>
    %193 = math.exp %192 : vector<2x32xf32>
    %cst_59 = arith.constant 1.000000e+00 : f32
    %194 = vector.broadcast %cst_59 : f32 to vector<2x32xf32>
    %195 = arith.addf %194, %193 : vector<2x32xf32>
    %196 = arith.divf %194, %195 : vector<2x32xf32>
    %197 = vector.extract_strided_slice %25 {offsets = [0, 4, 0], sizes = [2, 1, 32], strides = [1, 1, 1]} : vector<2x8x32xf32> to vector<2x1x32xf32>
    %198 = vector.shape_cast %197 : vector<2x1x32xf32> to vector<2x32xf32>
    %199 = arith.addf %198, %185 : vector<2x32xf32>
    %200 = arith.negf %199 : vector<2x32xf32>
    %201 = math.exp %200 : vector<2x32xf32>
    %cst_60 = arith.constant 1.000000e+00 : f32
    %202 = vector.broadcast %cst_60 : f32 to vector<2x32xf32>
    %203 = arith.addf %202, %201 : vector<2x32xf32>
    %204 = arith.divf %202, %203 : vector<2x32xf32>
    %205 = vector.extract_strided_slice %26 {offsets = [0, 4, 0], sizes = [2, 1, 32], strides = [1, 1, 1]} : vector<2x8x32xf32> to vector<2x1x32xf32>
    %206 = vector.shape_cast %205 : vector<2x1x32xf32> to vector<2x32xf32>
    %207 = arith.mulf %196, %188 : vector<2x32xf32>
    %208 = arith.addf %206, %207 : vector<2x32xf32>
    %209 = math.tanh %208 : vector<2x32xf32>
    %cst_61 = arith.constant 1.000000e+00 : f32
    %210 = vector.broadcast %cst_61 : f32 to vector<2x32xf32>
    %211 = arith.subf %210, %204 : vector<2x32xf32>
    %212 = arith.mulf %211, %209 : vector<2x32xf32>
    %213 = arith.mulf %204, %179 : vector<2x32xf32>
    %214 = arith.addf %212, %213 : vector<2x32xf32>
    %cst_62 = arith.constant dense<0.000000e+00> : vector<2x32xf32>
    %215 = tpu.matmul %214, %28, %cst_62 {dimension_numbers = #tpu.dot_dimension_numbers<[1], [0], [0], [1], [0, 0, 1, 1], [], []>} : vector<2x32xf32>, vector<32x32xf32>, vector<2x32xf32> -> vector<2x32xf32>
    %216 = vector.broadcast %34 : vector<1x32xf32> to vector<2x32xf32>
    %217 = arith.addf %215, %216 : vector<2x32xf32>
    %cst_63 = arith.constant dense<0.000000e+00> : vector<2x32xf32>
    %218 = tpu.matmul %214, %30, %cst_63 {dimension_numbers = #tpu.dot_dimension_numbers<[1], [0], [0], [1], [0, 0, 1, 1], [], []>} : vector<2x32xf32>, vector<32x32xf32>, vector<2x32xf32> -> vector<2x32xf32>
    %219 = vector.broadcast %36 : vector<1x32xf32> to vector<2x32xf32>
    %220 = arith.addf %218, %219 : vector<2x32xf32>
    %cst_64 = arith.constant dense<0.000000e+00> : vector<2x32xf32>
    %221 = tpu.matmul %214, %32, %cst_64 {dimension_numbers = #tpu.dot_dimension_numbers<[1], [0], [0], [1], [0, 0, 1, 1], [], []>} : vector<2x32xf32>, vector<32x32xf32>, vector<2x32xf32> -> vector<2x32xf32>
    %222 = vector.broadcast %38 : vector<1x32xf32> to vector<2x32xf32>
    %223 = arith.addf %221, %222 : vector<2x32xf32>
    %224 = vector.extract_strided_slice %24 {offsets = [0, 5, 0], sizes = [2, 1, 32], strides = [1, 1, 1]} : vector<2x8x32xf32> to vector<2x1x32xf32>
    %225 = vector.shape_cast %224 : vector<2x1x32xf32> to vector<2x32xf32>
    %226 = arith.addf %225, %217 : vector<2x32xf32>
    %227 = arith.negf %226 : vector<2x32xf32>
    %228 = math.exp %227 : vector<2x32xf32>
    %cst_65 = arith.constant 1.000000e+00 : f32
    %229 = vector.broadcast %cst_65 : f32 to vector<2x32xf32>
    %230 = arith.addf %229, %228 : vector<2x32xf32>
    %231 = arith.divf %229, %230 : vector<2x32xf32>
    %232 = vector.extract_strided_slice %25 {offsets = [0, 5, 0], sizes = [2, 1, 32], strides = [1, 1, 1]} : vector<2x8x32xf32> to vector<2x1x32xf32>
    %233 = vector.shape_cast %232 : vector<2x1x32xf32> to vector<2x32xf32>
    %234 = arith.addf %233, %220 : vector<2x32xf32>
    %235 = arith.negf %234 : vector<2x32xf32>
    %236 = math.exp %235 : vector<2x32xf32>
    %cst_66 = arith.constant 1.000000e+00 : f32
    %237 = vector.broadcast %cst_66 : f32 to vector<2x32xf32>
    %238 = arith.addf %237, %236 : vector<2x32xf32>
    %239 = arith.divf %237, %238 : vector<2x32xf32>
    %240 = vector.extract_strided_slice %26 {offsets = [0, 5, 0], sizes = [2, 1, 32], strides = [1, 1, 1]} : vector<2x8x32xf32> to vector<2x1x32xf32>
    %241 = vector.shape_cast %240 : vector<2x1x32xf32> to vector<2x32xf32>
    %242 = arith.mulf %231, %223 : vector<2x32xf32>
    %243 = arith.addf %241, %242 : vector<2x32xf32>
    %244 = math.tanh %243 : vector<2x32xf32>
    %cst_67 = arith.constant 1.000000e+00 : f32
    %245 = vector.broadcast %cst_67 : f32 to vector<2x32xf32>
    %246 = arith.subf %245, %239 : vector<2x32xf32>
    %247 = arith.mulf %246, %244 : vector<2x32xf32>
    %248 = arith.mulf %239, %214 : vector<2x32xf32>
    %249 = arith.addf %247, %248 : vector<2x32xf32>
    %cst_68 = arith.constant dense<0.000000e+00> : vector<2x32xf32>
    %250 = tpu.matmul %249, %28, %cst_68 {dimension_numbers = #tpu.dot_dimension_numbers<[1], [0], [0], [1], [0, 0, 1, 1], [], []>} : vector<2x32xf32>, vector<32x32xf32>, vector<2x32xf32> -> vector<2x32xf32>
    %251 = vector.broadcast %34 : vector<1x32xf32> to vector<2x32xf32>
    %252 = arith.addf %250, %251 : vector<2x32xf32>
    %cst_69 = arith.constant dense<0.000000e+00> : vector<2x32xf32>
    %253 = tpu.matmul %249, %30, %cst_69 {dimension_numbers = #tpu.dot_dimension_numbers<[1], [0], [0], [1], [0, 0, 1, 1], [], []>} : vector<2x32xf32>, vector<32x32xf32>, vector<2x32xf32> -> vector<2x32xf32>
    %254 = vector.broadcast %36 : vector<1x32xf32> to vector<2x32xf32>
    %255 = arith.addf %253, %254 : vector<2x32xf32>
    %cst_70 = arith.constant dense<0.000000e+00> : vector<2x32xf32>
    %256 = tpu.matmul %249, %32, %cst_70 {dimension_numbers = #tpu.dot_dimension_numbers<[1], [0], [0], [1], [0, 0, 1, 1], [], []>} : vector<2x32xf32>, vector<32x32xf32>, vector<2x32xf32> -> vector<2x32xf32>
    %257 = vector.broadcast %38 : vector<1x32xf32> to vector<2x32xf32>
    %258 = arith.addf %256, %257 : vector<2x32xf32>
    %259 = vector.extract_strided_slice %24 {offsets = [0, 6, 0], sizes = [2, 1, 32], strides = [1, 1, 1]} : vector<2x8x32xf32> to vector<2x1x32xf32>
    %260 = vector.shape_cast %259 : vector<2x1x32xf32> to vector<2x32xf32>
    %261 = arith.addf %260, %252 : vector<2x32xf32>
    %262 = arith.negf %261 : vector<2x32xf32>
    %263 = math.exp %262 : vector<2x32xf32>
    %cst_71 = arith.constant 1.000000e+00 : f32
    %264 = vector.broadcast %cst_71 : f32 to vector<2x32xf32>
    %265 = arith.addf %264, %263 : vector<2x32xf32>
    %266 = arith.divf %264, %265 : vector<2x32xf32>
    %267 = vector.extract_strided_slice %25 {offsets = [0, 6, 0], sizes = [2, 1, 32], strides = [1, 1, 1]} : vector<2x8x32xf32> to vector<2x1x32xf32>
    %268 = vector.shape_cast %267 : vector<2x1x32xf32> to vector<2x32xf32>
    %269 = arith.addf %268, %255 : vector<2x32xf32>
    %270 = arith.negf %269 : vector<2x32xf32>
    %271 = math.exp %270 : vector<2x32xf32>
    %cst_72 = arith.constant 1.000000e+00 : f32
    %272 = vector.broadcast %cst_72 : f32 to vector<2x32xf32>
    %273 = arith.addf %272, %271 : vector<2x32xf32>
    %274 = arith.divf %272, %273 : vector<2x32xf32>
    %275 = vector.extract_strided_slice %26 {offsets = [0, 6, 0], sizes = [2, 1, 32], strides = [1, 1, 1]} : vector<2x8x32xf32> to vector<2x1x32xf32>
    %276 = vector.shape_cast %275 : vector<2x1x32xf32> to vector<2x32xf32>
    %277 = arith.mulf %266, %258 : vector<2x32xf32>
    %278 = arith.addf %276, %277 : vector<2x32xf32>
    %279 = math.tanh %278 : vector<2x32xf32>
    %cst_73 = arith.constant 1.000000e+00 : f32
    %280 = vector.broadcast %cst_73 : f32 to vector<2x32xf32>
    %281 = arith.subf %280, %274 : vector<2x32xf32>
    %282 = arith.mulf %281, %279 : vector<2x32xf32>
    %283 = arith.mulf %274, %249 : vector<2x32xf32>
    %284 = arith.addf %282, %283 : vector<2x32xf32>
    %cst_74 = arith.constant dense<0.000000e+00> : vector<2x32xf32>
    %285 = tpu.matmul %284, %28, %cst_74 {dimension_numbers = #tpu.dot_dimension_numbers<[1], [0], [0], [1], [0, 0, 1, 1], [], []>} : vector<2x32xf32>, vector<32x32xf32>, vector<2x32xf32> -> vector<2x32xf32>
    %286 = vector.broadcast %34 : vector<1x32xf32> to vector<2x32xf32>
    %287 = arith.addf %285, %286 : vector<2x32xf32>
    %cst_75 = arith.constant dense<0.000000e+00> : vector<2x32xf32>
    %288 = tpu.matmul %284, %30, %cst_75 {dimension_numbers = #tpu.dot_dimension_numbers<[1], [0], [0], [1], [0, 0, 1, 1], [], []>} : vector<2x32xf32>, vector<32x32xf32>, vector<2x32xf32> -> vector<2x32xf32>
    %289 = vector.broadcast %36 : vector<1x32xf32> to vector<2x32xf32>
    %290 = arith.addf %288, %289 : vector<2x32xf32>
    %cst_76 = arith.constant dense<0.000000e+00> : vector<2x32xf32>
    %291 = tpu.matmul %284, %32, %cst_76 {dimension_numbers = #tpu.dot_dimension_numbers<[1], [0], [0], [1], [0, 0, 1, 1], [], []>} : vector<2x32xf32>, vector<32x32xf32>, vector<2x32xf32> -> vector<2x32xf32>
    %292 = vector.broadcast %38 : vector<1x32xf32> to vector<2x32xf32>
    %293 = arith.addf %291, %292 : vector<2x32xf32>
    %294 = vector.extract_strided_slice %24 {offsets = [0, 7, 0], sizes = [2, 1, 32], strides = [1, 1, 1]} : vector<2x8x32xf32> to vector<2x1x32xf32>
    %295 = vector.shape_cast %294 : vector<2x1x32xf32> to vector<2x32xf32>
    %296 = arith.addf %295, %287 : vector<2x32xf32>
    %297 = arith.negf %296 : vector<2x32xf32>
    %298 = math.exp %297 : vector<2x32xf32>
    %cst_77 = arith.constant 1.000000e+00 : f32
    %299 = vector.broadcast %cst_77 : f32 to vector<2x32xf32>
    %300 = arith.addf %299, %298 : vector<2x32xf32>
    %301 = arith.divf %299, %300 : vector<2x32xf32>
    %302 = vector.extract_strided_slice %25 {offsets = [0, 7, 0], sizes = [2, 1, 32], strides = [1, 1, 1]} : vector<2x8x32xf32> to vector<2x1x32xf32>
    %303 = vector.shape_cast %302 : vector<2x1x32xf32> to vector<2x32xf32>
    %304 = arith.addf %303, %290 : vector<2x32xf32>
    %305 = arith.negf %304 : vector<2x32xf32>
    %306 = math.exp %305 : vector<2x32xf32>
    %cst_78 = arith.constant 1.000000e+00 : f32
    %307 = vector.broadcast %cst_78 : f32 to vector<2x32xf32>
    %308 = arith.addf %307, %306 : vector<2x32xf32>
    %309 = arith.divf %307, %308 : vector<2x32xf32>
    %310 = vector.extract_strided_slice %26 {offsets = [0, 7, 0], sizes = [2, 1, 32], strides = [1, 1, 1]} : vector<2x8x32xf32> to vector<2x1x32xf32>
    %311 = vector.shape_cast %310 : vector<2x1x32xf32> to vector<2x32xf32>
    %312 = arith.mulf %301, %293 : vector<2x32xf32>
    %313 = arith.addf %311, %312 : vector<2x32xf32>
    %314 = math.tanh %313 : vector<2x32xf32>
    %cst_79 = arith.constant 1.000000e+00 : f32
    %315 = vector.broadcast %cst_79 : f32 to vector<2x32xf32>
    %316 = arith.subf %315, %309 : vector<2x32xf32>
    %317 = arith.mulf %316, %314 : vector<2x32xf32>
    %318 = arith.mulf %309, %284 : vector<2x32xf32>
    %319 = arith.addf %317, %318 : vector<2x32xf32>
    %c0_80 = arith.constant 0 : index
    %c0_81 = arith.constant 0 : index
    %320 = vector.load %arg9[%c0_80, %c0_81] : memref<2x32xf32, #tpu.memory_space<vmem>>, vector<2x32xf32>
    tpu.vector_store %arg9[%c0_80, %c0_81], %319 {strides = array<i32>} : memref<2x32xf32, #tpu.memory_space<vmem>>, vector<2x32xf32>,
    return
  }
}

</mosaic_0001>

<bundles_post_ra>
// kernel: num_encoder_forward.1
= control target key start
LH: loop header
LB: loop body
LE: loop exit
PB: predicated region body
PF: predicated region fallthrough
CT: control target
= control target key end

     0   :  { %15 = vsyncpa [#allocation3], 0  ;;  %v2204_v2 = vmov 0   ;;  %s2857_s0 = inlined_call_operand.vmem [shape: s32[16,1], index: 0, kind: input, shape index: {}]   ;;  %s2858_s1 = inlined_call_operand.vmem [shape: s32[16,1], index: 1, kind: input, shape index: {}]   ;;  %s2859_s2 = inlined_call_operand.vmem [shape: s32[16,1], index: 2, kind: input, shape index: {}]   ;;  %s2860_s3 = inlined_call_operand.vmem [shape: f32[96,32], index: 3, kind: input, shape index: {}]   ;;  %s2861_s4 = inlined_call_operand.vmem [shape: f32[32,128], index: 4, kind: input, shape index: {}]   ;;  %s2862_s5 = inlined_call_operand.vmem [shape: f32[1,128], index: 5, kind: input, shape index: {}]   ;;  %s2863_s6 = inlined_call_operand.vmem [shape: f32[3,32,32], index: 6, kind: input, shape index: {}]   ;;  %s2864_s7 = inlined_call_operand.vmem [shape: f32[3,1,32], index: 7, kind: input, shape index: {}]   ;;  %s2865_s8 = inlined_call_operand.hbm [shape: f32[2,8,32], index: 8, kind: output, shape index: {0}]   ;;  %s2866_s9 = inlined_call_operand.hbm [shape: f32[2,32], index: 9, kind: output, shape index: {1}]  }
   0x1   :  { %v57_v0 = vld [vmem:[%s2859_s2] sm:$0xff]  ;;  %1971 = vset.pattern.permute.xlu1 %v2204_v2  ;;  %1970 = vset.pattern.permute.xlu0 %v2204_v2  ;;  %v46_v3 = vld [vmem:[%s2858_s1 + $0x8] sm:$0xff]  ;;  %v84_v4 = vld [vmem:[%s2860_s3 + $0x58] sm:$0xff] }
   0x2   :  { %v35_v1 = vld [vmem:[%s2857_s0] sm:$0xff]  ;;  %60 = vperm.xlu1 %1971, %v57_v0   ;;  %v83_v5 = vld [vmem:[%s2860_s3 + $0x50] sm:$0xff]  ;;  %1972 = vset.pattern.permute.xlu2 %v2204_v2  ;;  %v82_v6 = vld [vmem:[%s2860_s3 + $0x48] sm:$0xff] }
   0x3   :  { %38 = vperm.xlu0 %1970, %v35_v1   ;;  %96 = vmatpush.msra.mxu0 %v84_v4 }
   0x4   :  { %51 = vperm.xlu2 %1972, %v46_v3  }
   0x5   :  { %97 = vmatpush.msra.mxu0 %v83_v5 }
   0x6   :  { %16 = vsyncpa [#allocation5], 0  ;;  %v81_v7 = vld [vmem:[%s2860_s3 + $0x40] sm:$0xff]  ;;  %v36_v8 = vld [vmem:[%s2857_s0 + $0x8] sm:$0xff]  ;;  %v2205_v21 = vmov 0.0   ;;  %v33_v37 = vlaneseq  ;;  %vm85_vm4 = vcmask 785408  }
   0x7   :  { %v45_v9 = vld [vmem:[%s2858_s1] sm:$0xff]  ;;  %98 = vmatpush.msra.mxu0 %v82_v6  ;;  %v80_v10 = vld [vmem:[%s2860_s3 + $0x38] sm:$0xff]  ;;  %v58_v11 = vld [vmem:[%s2859_s2 + $0x8] sm:$0xff]  ;;  %s2206_s30 = smov 32   ;;  %s2207_s1 = smov 64   ;;  %vm123_vm11 = vcmask 261120  }
   0x8   :  { %v79_v12 = vld [vmem:[%s2860_s3 + $0x30] sm:$0xff]  ;;  %v2302_v13 = vld [vmem:[%s2863_s6 + $0x18] sm:$0xff]  ;;  %v78_v14 = vld [vmem:[%s2860_s3 + $0x28] sm:$0xff]  ;;  %v34_v39 = vand.u32 127, %v33_v37  ;;  %s1864_s18 = sshll.u32 %s2865_s8, 4  ;;  %s2210_s19 = smov 128   ;;  %s1865_s18 = int_to_ptr.hbm [resolvable:$true] %s1864_s18 }
   0x9   :  { %99 = vmatpush.msra.mxu0 %v81_v7  ;;  %192 = vmatpush.msra.mxu2 %v2302_v13  ;;  %v2311_v15 = vld [vmem:[%s2863_s6 + $0x10] sm:$0xff]  ;;  %v77_v16 = vld [vmem:[%s2860_s3 + $0x20] sm:$0xff]  ;;  %v2319_v17 = vld [vmem:[%s2863_s6 + $0x8] sm:$0xff]  ;;  %s2211_s20 = smov 8   ;;  %s2212_s8 = smov [#allocation4]  }
   0xa   :  { %41 = vperm.xlu1 %1971, %v36_v8   ;;  %v76_v18 = vld [vmem:[%s2860_s3 + $0x18] sm:$0xff]  ;;  %v2328_v19 = vld [vmem:[%s2863_s6] sm:$0xff]  ;;  %v75_v20 = vld [vmem:[%s2860_s3 + $0x10] sm:$0xff]  ;;  %s1876_s21 = sshll.u32 %s2212_s8, 4  ;;  %s1878_s24 = sshll.u32 %s2866_s9, 4  ;;  %s1877_s21 = int_to_ptr.vmem [resolvable:$true] %s1876_s21  ;;  %s1879_s24 = int_to_ptr.hbm [resolvable:$true] %s1878_s24 }
   0xb   :  { %48 = vperm.xlu0 %1970, %v45_v9   ;;  %100 = vmatpush.msra.mxu0 %v80_v10  ;;  %v74_v22 = vld [vmem:[%s2860_s3 + $0x8] sm:$0xff]  ;;  %v2342_v23 = vld [vmem:[%s2863_s6 + $0x58] sm:$0xff]  ;;  %v73_v24 = vld [vmem:[%s2860_s3] sm:$0xff] }
   0xc   :  { %63 = vperm.xlu2 %1972, %v58_v11   ;;  %193 = vmatpush.msra.mxu2 %v2311_v15  ;;  %v2351_v25 = vld [vmem:[%s2863_s6 + $0x50] sm:$0xff]  ;;  %v2356_v26 = vld [vmem:[%s2863_s6 + $0x48] sm:$0xff]  ;;  %v2361_v27 = vld [vmem:[%s2863_s6 + $0x38] sm:$0xff] }
   0xd   :  { %101 = vmatpush.msra.mxu0 %v79_v12  ;;  %215 = vmatpush.msra.mxu3 %v2361_v27  ;;  %v2368_v28 = vld [vmem:[%s2863_s6 + $0x30] sm:$0xff]  ;;  %v2373_v29 = vld [vmem:[%s2863_s6 + $0x40] sm:$0xff]  ;;  %v2385_v30 = vld [vmem:[%s2863_s6 + $0x28] sm:$0xff] }
   0xe   :  { %194 = vmatpush.msra.mxu2 %v2319_v17  ;;  %v2390_v31 = vld [vmem:[%s2863_s6 + $0x20] sm:$0xff]  ;;  %v118_v32 = vld [vmem:[%s2861_s4 + $0x18] sm:$0xff]  ;;  %v117_v33 = vld [vmem:[%s2861_s4 + $0x10] sm:$0xff] }
   0xf   :  { %102 = vmatpush.msra.mxu0 %v78_v14  ;;  %216 = vmatpush.msra.mxu3 %v2368_v28  ;;  %v116_v34 = vld [vmem:[%s2861_s4 + $0x8] sm:$0xff]  ;;  %v115_v45 = vld [vmem:[%s2861_s4] sm:$0xff] }
  0x10   :  { %195 = vmatpush.msra.mxu2 %v2328_v19  ;;  %142 = vmatpush.msra.mxu1 %v118_v32  ;;  %v2433_v46 = vld [vmem:[%s2864_s7] ss:$0 sm:$0xff]  ;;  %v2445_v50 = vld [vmem:[%s2864_s7 + $0x2] ss:$0 sm:$0xff]  ;;  %v2452_v54 = vld [vmem:[%s2864_s7 + $0x1] ss:$0 sm:$0xff] }
  0x11   :  { %103 = vmatpush.msra.mxu0 %v77_v16  ;;  %196 = vmatmul.f32.vlgmr.msra.gmra.mxu2 %v2205_v21  ;;  %v1976_v60 = vld [vmem:[%s2862_s5] ss:$0 sm:$0xff]  ;;  %s2208_s5 = smov 96  }
  0x12   :  { %238 = vmatpush.msrb.mxu2 %v2342_v23  ;;  %217 = vmatpush.msra.mxu3 %v2385_v30 }
  0x13   :  { %104 = vmatpush.msra.mxu0 %v76_v18  ;;  %143 = vmatpush.msra.mxu1 %v117_v33 }
  0x14   :  { %239 = vmatpush.msrb.mxu2 %v2351_v25  ;;  %218 = vmatpush.msra.mxu3 %v2390_v31 }
  0x15   :  { %105 = vmatpush.msra.mxu0 %v75_v20  ;;  %219 = vmatmul.f32.vlgmr.msra.gmra.mxu3 %v2205_v21 }
  0x16   :  { %240 = vmatpush.msrb.mxu2 %v2356_v26  ;;  %144 = vmatpush.msra.mxu1 %v116_v34 }
  0x17   :  { %106 = vmatpush.msra.mxu0 %v74_v22  ;;  %401 = vmatpush.msrb.mxu3 %v2302_v13 }
  0x18   :  { %241 = vmatpush.msrb.mxu2 %v2373_v29  ;;  %145 = vmatpush.msra.mxu1 %v115_v45 }
  0x19   :  { %107 = vmatpush.msra.mxu0 %v73_v24  ;;  %242 = vmatmul.f32.vlgmr.msrb.gmra.mxu2 %v2205_v21 }
  0x1a   :  { %441 = vmatpush.msra.mxu2 %v2342_v23  ;;  %402 = vmatpush.msrb.mxu3 %v2311_v15 }
  0x1b   :  { %836 = vmatpush.msrb.mxu0 %v2361_v27  ;;  %421 = vmatpush.msrb.mxu1 %v2361_v27 }
  0x1c   :  { %442 = vmatpush.msra.mxu2 %v2351_v25  ;;  %403 = vmatpush.msrb.mxu3 %v2319_v17 }
  0x1d   :  { %837 = vmatpush.msrb.mxu0 %v2368_v28  ;;  %422 = vmatpush.msrb.mxu1 %v2368_v28 }
  0x1e   :  { %443 = vmatpush.msra.mxu2 %v2356_v26  ;;  %404 = vmatpush.msrb.mxu3 %v2328_v19 }
  0x1f   :  { %838 = vmatpush.msrb.mxu0 %v2385_v30  ;;  %423 = vmatpush.msrb.mxu1 %v2385_v30 }
  0x20   :  { %444 = vmatpush.msra.mxu2 %v2373_v29  ;;  %606 = vmatpush.msra.mxu3 %v2302_v13 }
  0x21   :  { %839 = vmatpush.msrb.mxu0 %v2390_v31  ;;  %424 = vmatpush.msrb.mxu1 %v2390_v31 }
  0x22   :  { %646 = vmatpush.msrb.mxu2 %v2342_v23  ;;  %607 = vmatpush.msra.mxu3 %v2311_v15 }
  0x24   :  { %647 = vmatpush.msrb.mxu2 %v2351_v25  ;;  %608 = vmatpush.msra.mxu3 %v2319_v17 }
  0x26   :  { %648 = vmatpush.msrb.mxu2 %v2356_v26  ;;  %609 = vmatpush.msra.mxu3 %v2328_v19 }
  0x28   :  { %649 = vmatpush.msrb.mxu2 %v2373_v29 }
  0x5e   :  { %v52_v38 = vpop.permute.xlu2 %51 }
  0x5f   :  { %vm54_vm5 = vcmp.eq.s32.totalorder %v34_v39, %v52_v38 }
  0x66   :  { %v64_v42 = vpop.permute.xlu2 %63 }
  0x67   :  { %vm66_vm9 = vcmp.eq.s32.totalorder %v34_v39, %v64_v42 }
  0x74   :  { %v61_v35 = vpop.permute.xlu1 %60 }
  0x75   :  { %v39_v36 = vpop.permute.xlu0 %38  ;;  %vm65_vm0 = vcmp.eq.s32.totalorder %v34_v39, %v61_v35 }
  0x76   :  { %vm43_vm2 = vcmp.eq.s32.totalorder %v34_v39, %v39_v36 }
  0x7c   :  { %v42_v41 = vpop.permute.xlu1 %41 }
  0x7d   :  { %v49_v40 = vpop.permute.xlu0 %48  ;;  %vm44_vm6 = vcmp.eq.s32.totalorder %v34_v39, %v42_v41 }
  0x7e   :  { %vm53_vm1 = vcmp.eq.s32.totalorder %v34_v39, %v49_v40  ;;  %vm56_vm8 = vmor %vm44_vm6, %vm54_vm5 }
  0x7f   :  { %vm55_vm3 = vmor %vm43_vm2, %vm53_vm1 }
  0x80   :  { %vm67_vm7 = vmor %vm55_vm3, %vm65_vm0 }
  0x81   :  { %v1892_v43 = vsel %vm67_vm7, 1.0, %v2205_v21  ;;  %vm68_vm10 = vmor %vm56_vm8, %vm66_vm9 }
  0x82   :  { %1894 = vmatmul.msk.f32.vlgmr.msra.gmra.mxu0 %vm85_vm4, %v1892_v43  ;;  %v1893_v44 = vsel %vm68_vm10, 1.0, %v2205_v21 }
  0x83   :  { %1066 = vmatpush.msra.mxu0 %v2342_v23 }
  0x85   :  { %1067 = vmatpush.msra.mxu0 %v2351_v25 }
  0x87   :  { %1068 = vmatpush.msra.mxu0 %v2356_v26 }
  0x89   :  { %1069 = vmatpush.msra.mxu0 %v2373_v29 }
  0x8a   :  { %1895 = vmatmul.msk.f32.gmra.mxu0 %vm85_vm4, %v1893_v44 }
  0x94   :  { %v197_v47 = vpop.f32.mrf.mxu2 }
  0x95   :  { %v198_v48 = vadd.f32 %v2433_v46, %v197_v47 }
  0x97   :  { %v247_v49 = vrot.slane %v198_v48, 1  ;;  %248 = vrot.lane.b32.xlu1 %v198_v48, %s2206_s30 }
  0x98   :  { %v220_v55 = vpop.f32.mrf.mxu3 }
  0x99   :  { %250 = vrot.lane.b32.xlu0 %v247_v49, %s2206_s30  ;;  %v2456_v56 = vadd.f32 %v2452_v54, %v220_v55 }
  0x9b   :  { %v295_v57 = vrot.slane %v2456_v56, 1 }
  0x9c   :  { %v243_v51 = vpop.f32.mrf.mxu2 }
  0x9d   :  { %v244_v52 = vadd.f32 %v2445_v50, %v243_v51 }
  0x9f   :  { %v343_v53 = vrot.slane %v244_v52, 1 }
  0xa1   :  { %344 = vrot.lane.b32.xlu0 %v244_v52, %s2206_s30  ;;  %346 = vrot.lane.b32.xlu2 %v343_v53, %s2206_s30 }
  0xa9   :  { %298 = vrot.lane.b32.xlu0 %v295_v57, %s2207_s1 }
  0xfb   :  { %v347_v44 = vpop.permute.xlu2 %346 }
  0xff   :  { %v109_v58 = vpop.f32.mrf.mxu0 }
 0x100   :  { %1896 = vmatmul.msk.f32.vlgmr.msra.gmra.mxu1 %vm123_vm11, %v109_v58 }
 0x101   :  { %626 = vmatpush.msra.mxu1 %v2361_v27 }
 0x103   :  { %627 = vmatpush.msra.mxu1 %v2368_v28 }
 0x105   :  { %628 = vmatpush.msra.mxu1 %v2385_v30 }
 0x107   :  { %v112_v59 = vpop.f32.mrf.mxu0  ;;  %629 = vmatpush.msra.mxu1 %v2390_v31 }
 0x108   :  { %1897 = vmatmul.msk.f32.gmra.mxu1 %vm123_vm11, %v112_v59 }
 0x109   :  { %v249_v62 = vpop.permute.xlu1 %248 }
 0x10b   :  { %v251_v4 = vpop.permute.xlu0 %250 }
 0x113   :  { %v345_v33 = vpop.permute.xlu0 %344 }
 0x11b   :  { %v299_v57 = vpop.permute.xlu0 %298 }
 0x17d   :  { %v147_v61 = vpop.f32.mrf.mxu1 }
 0x17e   :  { %v2469_v63 = vadd.f32 %v1976_v60, %v147_v61 }
 0x180   :  { %153 = vst.msk [vmem:[#allocation2] sm:$0xff] %vm123_vm11, %v2469_v63  ;;  %v254_v0 = vadd.f32 %v249_v62, %v2469_v63 }
 0x182   :  { %v1908_v1 = vmul.f32 -1.442695, %v254_v0 }
 0x184   :  { %1977 = vpow2.f32 %v1908_v1 }
 0x185   :  { %v150_v2 = vpop.f32.mrf.mxu1 }
 0x186   :  { %v2474_v3 = vadd.f32 %v1976_v60, %v150_v2 }
 0x188   :  { %154 = vst.msk [vmem:[#allocation2 + $0x8] sm:$0xff] %vm123_vm11, %v2474_v3  ;;  %v255_v5 = vadd.f32 %v251_v4, %v2474_v3  ;;  %v303_v59 = vadd.f32 %v299_v57, %v2474_v3 }
 0x18a   :  { %v1978_v6 = vpop.eup %1977  ;;  %v1909_v7 = vmul.f32 -1.442695, %v255_v5  ;;  %v1911_v60 = vmul.f32 -1.442695, %v303_v59 }
 0x18b   :  { %v262_v8 = vadd.f32 1.0, %v1978_v6 }
 0x18d   :  { %1979 = vrcp.f32 %v262_v8  ;;  %v275_v16 = vand.u32 2147483648, %v262_v8  ;;  %v273_v20 = vand.u32 2147483647, %v262_v8  ;;  %vm269_vm13 = vweird.f32 %v262_v8 }
 0x18e   :  { %1981 = vpow2.f32 %v1909_v7 }
 0x18f   :  { %v276_v22 = vor.u32 1.1754944e-38, %v275_v16  ;;  %vm274_vm15 = vcmp.eq.f32.partialorder %v273_v20, 8.507059e+37 }
 0x193   :  { %v1980_v9 = vpop.eup %1979 }
 0x194   :  { %v1982_v10 = vpop.eup %1981  ;;  %v265_v11 = vmul.f32 %v1980_v9, %v262_v8  ;;  %vm270_vm12 = vweird.f32 %v1980_v9 }
 0x195   :  { %v263_v12 = vadd.f32 1.0, %v1982_v10  ;;  %vm271_vm14 = vmor %vm269_vm13, %vm270_vm12  ;;  %vm383_vm13 = vcmask 1041409  }
 0x196   :  { %v266_v14 = vsub.f32 1.0, %v265_v11 }
 0x197   :  { %1983 = vrcp.f32 %v263_v12  ;;  %v290_v38 = vand.u32 2147483648, %v263_v12  ;;  %v288_v40 = vand.u32 2147483647, %v263_v12  ;;  %vm284_vm1 = vweird.f32 %v263_v12 }
 0x198   :  { %v267_v18 = vmul.f32 %v1980_v9, %v266_v14 }
 0x199   :  { %v291_v42 = vor.u32 1.1754944e-38, %v290_v38  ;;  %vm289_vm3 = vcmp.eq.f32.partialorder %v288_v40, 8.507059e+37 }
 0x19a   :  { %v268_v21 = vadd.f32 %v1980_v9, %v267_v18 }
 0x19c   :  { %v272_v24 = vsel %vm271_vm14, %v1980_v9, %v268_v21 }
 0x19d   :  { %v1984_v32 = vpop.eup %1983  ;;  %v277_v34 = vsel %vm274_vm15, %v276_v22, %v272_v24 }
 0x19e   :  { %v350_v35 = vmul.f32 %v345_v33, %v277_v34  ;;  %v280_v36 = vmul.f32 %v1984_v32, %v263_v12  ;;  %vm285_vm0 = vweird.f32 %v1984_v32 }
 0x19f   :  { %vm286_vm2 = vmor %vm284_vm1, %vm285_vm0 }
 0x1a0   :  { %v281_v37 = vsub.f32 1.0, %v280_v36  ;;  %354 = vrot.lane.b32.xlu2 %v350_v35, %s2207_s1 }
 0x1a2   :  { %v282_v39 = vmul.f32 %v1984_v32, %v281_v37 }
 0x1a4   :  { %v283_v41 = vadd.f32 %v1984_v32, %v282_v39 }
 0x1a6   :  { %v287_v43 = vsel %vm286_vm2, %v1984_v32, %v283_v41 }
 0x1a7   :  { %v292_v45 = vsel %vm289_vm3, %v291_v42, %v287_v43 }
 0x1a8   :  { %v351_v47 = vmul.f32 %v347_v44, %v292_v45 }
 0x1aa   :  { %356 = vrot.lane.b32.xlu1 %v351_v47, %s2207_s1 }
 0x1b2   :  { %296 = vrot.lane.b32.xlu1 %v2456_v56, %s2207_s1 }
 0x1fa   :  { %v355_v48 = vpop.permute.xlu2 %354 }
 0x1fb   :  { %v360_v49 = vadd.f32 %v355_v48, %v2469_v63 }
 0x1fd   :  { %1985 = vtanh.f32 %v360_v49 }
 0x203   :  { %v1986_v51 = vpop.eup %1985 }
 0x204   :  { %368 = vrot.lane.b32.xlu0 %v1986_v51, %s2208_s5 }
 0x21c   :  { %v357_v52 = vpop.permute.xlu1 %356 }
 0x21d   :  { %v361_v53 = vadd.f32 %v357_v52, %v2474_v3 }
 0x21f   :  { %1987 = vtanh.f32 %v361_v53 }
 0x220   :  { %1989 = vpow2.f32 %v1911_v60 }
 0x224   :  { %v297_v58 = vpop.permute.xlu1 %296 }
 0x225   :  { %v1988_v55 = vpop.eup %1987  ;;  %v302_v56 = vadd.f32 %v297_v58, %v2469_v63 }
 0x226   :  { %370 = vrot.lane.b32.xlu2 %v1988_v55, %s2208_s5  ;;  %v1990_v62 = vpop.eup %1989 }
 0x227   :  { %v1910_v61 = vmul.f32 -1.442695, %v302_v56  ;;  %v311_v1 = vadd.f32 1.0, %v1990_v62 }
 0x229   :  { %1991 = vpow2.f32 %v1910_v61  ;;  %vm332_vm6 = vweird.f32 %v311_v1  ;;  %v338_v18 = vand.u32 2147483648, %v311_v1  ;;  %v336_v21 = vand.u32 2147483647, %v311_v1 }
 0x22a   :  { %1993 = vrcp.f32 %v311_v1 }
 0x22b   :  { %v339_v33 = vor.u32 1.1754944e-38, %v338_v18  ;;  %vm337_vm12 = vcmp.eq.f32.partialorder %v336_v21, 8.507059e+37 }
 0x22f   :  { %v1992_v0 = vpop.eup %1991 }
 0x230   :  { %v310_v2 = vadd.f32 1.0, %v1992_v0  ;;  %v1994_v4 = vpop.eup %1993 }
 0x231   :  { %v328_v7 = vmul.f32 %v1994_v4, %v311_v1  ;;  %vm333_vm4 = vweird.f32 %v1994_v4 }
 0x232   :  { %1995 = vrcp.f32 %v310_v2  ;;  %v323_v16 = vand.u32 2147483648, %v310_v2  ;;  %vm317_vm7 = vweird.f32 %v310_v2  ;;  %v321_v20 = vand.u32 2147483647, %v310_v2  ;;  %vm334_vm8 = vmor %vm332_vm6, %vm333_vm4 }
 0x233   :  { %v329_v9 = vsub.f32 1.0, %v328_v7 }
 0x234   :  { %v324_v32 = vor.u32 1.1754944e-38, %v323_v16  ;;  %vm322_vm10 = vcmp.eq.f32.partialorder %v321_v20, 8.507059e+37 }
 0x235   :  { %v330_v11 = vmul.f32 %v1994_v4, %v329_v9 }
 0x237   :  { %v331_v14 = vadd.f32 %v1994_v4, %v330_v11 }
 0x238   :  { %v1996_v5 = vpop.eup %1995 }
 0x239   :  { %v313_v6 = vmul.f32 %v1996_v5, %v310_v2  ;;  %vm318_vm5 = vweird.f32 %v1996_v5  ;;  %v335_v24 = vsel %vm334_vm8, %v1994_v4, %v331_v14 }
 0x23a   :  { %vm319_vm9 = vmor %vm317_vm7, %vm318_vm5  ;;  %v340_v35 = vsel %vm337_vm12, %v339_v33, %v335_v24 }
 0x23b   :  { %v314_v8 = vsub.f32 1.0, %v313_v6  ;;  %v365_v38 = vsub.f32 1.0, %v340_v35  ;;  %v377_v41 = vmul.f32 0.0, %v340_v35 }
 0x23d   :  { %v315_v10 = vmul.f32 %v1996_v5, %v314_v8 }
 0x23f   :  { %v316_v12 = vadd.f32 %v1996_v5, %v315_v10 }
 0x241   :  { %v320_v22 = vsel %vm319_vm9, %v1996_v5, %v316_v12 }
 0x242   :  { %v325_v34 = vsel %vm322_vm10, %v324_v32, %v320_v22 }
 0x243   :  { %v364_v37 = vsub.f32 1.0, %v325_v34  ;;  %v376_v43 = vmul.f32 0.0, %v325_v34 }
 0x276   :  { %v369_v36 = vpop.permute.xlu0 %368 }
 0x277   :  { %v374_v40 = vmul.f32 %v369_v36, %v364_v37 }
 0x279   :  { %v2491_v45 = vadd.f32 %v376_v43, %v374_v40 }
 0x280   :  { %v371_v39 = vpop.permute.xlu2 %370 }
 0x281   :  { %v375_v42 = vmul.f32 %v371_v39, %v365_v38 }
 0x283   :  { %v2489_v44 = vadd.f32 %v377_v41, %v375_v42 }
 0x285   :  { %v382_v47 = vrot.slane %v2489_v44, 7 }
 0x287   :  { %v384_v48 = vsel %vm383_vm13, %v382_v47, %v2491_v45 }
 0x288   :  { %385 = vrot.lane.b32.xlu1 %v384_v48, %s2207_s1 }
 0x2fa   :  { %v386_v49 = vpop.permute.xlu1 %385 }
 0x2fb   :  { %1912 = vmatmul.msk.f32.vlgmr.msrb.gmra.mxu3 %vm123_vm11, %v386_v49  ;;  %1913 = vmatmul.msk.f32.vlgmr.msrb.gmra.mxu1 %vm123_vm11, %v386_v49 }
 0x2fc   :  { %1914 = vmatmul.msk.f32.vlgmr.msra.gmra.mxu2 %vm123_vm11, %v386_v49  ;;  %816 = vmatpush.msrb.mxu3 %v2302_v13 }
 0x2fd   :  { %856 = vmatpush.msrb.mxu1 %v2342_v23  ;;  %1026 = vmatpush.msra.mxu2 %v2302_v13 }
 0x2fe   :  { %817 = vmatpush.msrb.mxu3 %v2311_v15 }
 0x2ff   :  { %857 = vmatpush.msrb.mxu1 %v2351_v25  ;;  %1027 = vmatpush.msra.mxu2 %v2311_v15 }
 0x300   :  { %818 = vmatpush.msrb.mxu3 %v2319_v17 }
 0x301   :  { %858 = vmatpush.msrb.mxu1 %v2356_v26  ;;  %1028 = vmatpush.msra.mxu2 %v2319_v17 }
 0x302   :  { %819 = vmatpush.msrb.mxu3 %v2328_v19 }
 0x303   :  { %859 = vmatpush.msrb.mxu1 %v2373_v29  ;;  %1029 = vmatpush.msra.mxu2 %v2328_v19 }
 0x378   :  { %v426_v26 = vpop.f32.mrf.mxu1 }
 0x379   :  { %v427_v29 = vadd.f32 %v2452_v54, %v426_v26 }
 0x37b   :  { %v498_v57 = vrot.slane %v427_v29, 7 }
 0x37e   :  { %v406_v23 = vpop.f32.mrf.mxu3 }
 0x37f   :  { %v407_v51 = vadd.f32 %v2433_v46, %v406_v23  ;;  %v446_v52 = vpop.f32.mrf.mxu2 }
 0x380   :  { %v447_v25 = vadd.f32 %v2445_v50, %v446_v52 }
 0x381   :  { %v450_v53 = vrot.slane %v407_v51, 7  ;;  %453 = vrot.lane.b32.xlu0 %v407_v51, %s2206_s30 }
 0x382   :  { %v546_v55 = vrot.slane %v447_v25, 7 }
 0x383   :  { %451 = vrot.lane.b32.xlu2 %v450_v53, %s2206_s30 }
 0x384   :  { %547 = vrot.lane.b32.xlu1 %v546_v55, %s2206_s30 }
 0x38b   :  { %549 = vrot.lane.b32.xlu2 %v447_v25, %s2206_s30 }
 0x393   :  { %499 = vrot.lane.b32.xlu2 %v498_v57, %s2207_s1 }
 0x3dd   :  { %v452_v58 = vpop.permute.xlu2 %451 }
 0x3de   :  { %v457_v59 = vadd.f32 %v452_v58, %v2469_v63 }
 0x3e0   :  { %v1915_v56 = vmul.f32 -1.442695, %v457_v59 }
 0x3e2   :  { %1997 = vpow2.f32 %v1915_v56 }
 0x3e5   :  { %v550_v38 = vpop.permute.xlu2 %549 }
 0x3e8   :  { %v1998_v60 = vpop.eup %1997 }
 0x3e9   :  { %v465_v61 = vadd.f32 1.0, %v1998_v60 }
 0x3eb   :  { %1999 = vrcp.f32 %v465_v61  ;;  %v478_v5 = vand.u32 2147483648, %v465_v61  ;;  %v476_v8 = vand.u32 2147483647, %v465_v61  ;;  %vm472_vm15 = vweird.f32 %v465_v61 }
 0x3ed   :  { %v479_v10 = vor.u32 1.1754944e-38, %v478_v5  ;;  %vm477_vm1 = vcmp.eq.f32.partialorder %v476_v8, 8.507059e+37  ;;  %v500_v51 = vpop.permute.xlu2 %499 }
 0x3ee   :  { %v505_v25 = vadd.f32 %v500_v51, %v2469_v63 }
 0x3f0   :  { %v1917_v55 = vmul.f32 -1.442695, %v505_v25 }
 0x3f1   :  { %v2000_v62 = vpop.eup %1999 }
 0x3f2   :  { %v468_v0 = vmul.f32 %v2000_v62, %v465_v61  ;;  %vm473_vm14 = vweird.f32 %v2000_v62 }
 0x3f3   :  { %v454_v1 = vpop.permute.xlu0 %453  ;;  %vm474_vm0 = vmor %vm472_vm15, %vm473_vm14 }
 0x3f4   :  { %v458_v2 = vadd.f32 %v454_v1, %v2474_v3  ;;  %v469_v4 = vsub.f32 1.0, %v468_v0 }
 0x3f6   :  { %v1916_v6 = vmul.f32 -1.442695, %v458_v2  ;;  %v470_v7 = vmul.f32 %v2000_v62, %v469_v4  ;;  %v548_v12 = vpop.permute.xlu1 %547 }
 0x3f8   :  { %2001 = vpow2.f32 %v1916_v6  ;;  %v471_v9 = vadd.f32 %v2000_v62, %v470_v7 }
 0x3fa   :  { %v475_v11 = vsel %vm474_vm0, %v2000_v62, %v471_v9 }
 0x3fb   :  { %v480_v14 = vsel %vm477_vm1, %v479_v10, %v475_v11 }
 0x3fc   :  { %v553_v16 = vmul.f32 %v548_v12, %v480_v14 }
 0x3fe   :  { %v2002_v18 = vpop.eup %2001  ;;  %557 = vrot.lane.b32.xlu0 %v553_v16, %s2207_s1 }
 0x3ff   :  { %v466_v20 = vadd.f32 1.0, %v2002_v18 }
 0x401   :  { %2003 = vrcp.f32 %v466_v20  ;;  %v493_v32 = vand.u32 2147483648, %v466_v20  ;;  %v491_v34 = vand.u32 2147483647, %v466_v20  ;;  %vm487_vm3 = vweird.f32 %v466_v20 }
 0x403   :  { %v494_v36 = vor.u32 1.1754944e-38, %v493_v32  ;;  %vm492_vm5 = vcmp.eq.f32.partialorder %v491_v34, 8.507059e+37 }
 0x406   :  { %501 = vrot.lane.b32.xlu0 %v427_v29, %s2207_s1 }
 0x407   :  { %v2004_v21 = vpop.eup %2003 }
 0x408   :  { %v483_v22 = vmul.f32 %v2004_v21, %v466_v20  ;;  %vm488_vm2 = vweird.f32 %v2004_v21 }
 0x409   :  { %vm489_vm4 = vmor %vm487_vm3, %vm488_vm2 }
 0x40a   :  { %v484_v24 = vsub.f32 1.0, %v483_v22  ;;  %v579_v22 = vrot.slane %v2491_v45, 7 }
 0x40c   :  { %v485_v33 = vmul.f32 %v2004_v21, %v484_v24 }
 0x40e   :  { %v486_v35 = vadd.f32 %v2004_v21, %v485_v33 }
 0x410   :  { %v490_v37 = vsel %vm489_vm4, %v2004_v21, %v486_v35 }
 0x411   :  { %v495_v39 = vsel %vm492_vm5, %v494_v36, %v490_v37 }
 0x412   :  { %v554_v40 = vmul.f32 %v550_v38, %v495_v39 }
 0x414   :  { %559 = vrot.lane.b32.xlu1 %v554_v40, %s2207_s1 }
 0x470   :  { %v558_v41 = vpop.permute.xlu0 %557 }
 0x471   :  { %v563_v42 = vadd.f32 %v558_v41, %v2469_v63 }
 0x473   :  { %2005 = vtanh.f32 %v563_v42 }
 0x478   :  { %v502_v52 = vpop.permute.xlu0 %501 }
 0x479   :  { %v2006_v43 = vpop.eup %2005  ;;  %v506_v53 = vadd.f32 %v502_v52, %v2474_v3 }
 0x47a   :  { %571 = vrot.lane.b32.xlu1 %v2006_v43, %s2208_s5 }
 0x47b   :  { %v1918_v26 = vmul.f32 -1.442695, %v506_v53 }
 0x486   :  { %v560_v48 = vpop.permute.xlu1 %559 }
 0x487   :  { %v564_v49 = vadd.f32 %v560_v48, %v2474_v3 }
 0x489   :  { %2007 = vtanh.f32 %v564_v49 }
 0x48a   :  { %2009 = vpow2.f32 %v1917_v55 }
 0x48b   :  { %2011 = vpow2.f32 %v1918_v26 }
 0x48f   :  { %v2008_v23 = vpop.eup %2007 }
 0x490   :  { %573 = vrot.lane.b32.xlu2 %v2008_v23, %s2208_s5  ;;  %v2010_v29 = vpop.eup %2009 }
 0x491   :  { %v2012_v57 = vpop.eup %2011  ;;  %v513_v58 = vadd.f32 1.0, %v2010_v29 }
 0x492   :  { %v514_v59 = vadd.f32 1.0, %v2012_v57 }
 0x493   :  { %2013 = vrcp.f32 %v513_v58  ;;  %vm520_vm8 = vweird.f32 %v513_v58  ;;  %v526_v8 = vand.u32 2147483648, %v513_v58  ;;  %v524_v10 = vand.u32 2147483647, %v513_v58 }
 0x494   :  { %2015 = vrcp.f32 %v514_v59  ;;  %v541_v7 = vand.u32 2147483648, %v514_v59  ;;  %vm535_vm9 = vweird.f32 %v514_v59  ;;  %v539_v9 = vand.u32 2147483647, %v514_v59 }
 0x495   :  { %v527_v16 = vor.u32 1.1754944e-38, %v526_v8  ;;  %vm525_vm15 = vcmp.eq.f32.partialorder %v524_v10, 8.507059e+37 }
 0x496   :  { %v542_v14 = vor.u32 1.1754944e-38, %v541_v7  ;;  %vm540_vm14 = vcmp.eq.f32.partialorder %v539_v9, 8.507059e+37 }
 0x499   :  { %v2014_v56 = vpop.eup %2013 }
 0x49a   :  { %v2016_v60 = vpop.eup %2015  ;;  %v516_v62 = vmul.f32 %v2014_v56, %v513_v58  ;;  %vm521_vm6 = vweird.f32 %v2014_v56 }
 0x49b   :  { %v531_v61 = vmul.f32 %v2016_v60, %v514_v59  ;;  %vm536_vm7 = vweird.f32 %v2016_v60  ;;  %vm522_vm10 = vmor %vm520_vm8, %vm521_vm6 }
 0x49c   :  { %v517_v1 = vsub.f32 1.0, %v516_v62  ;;  %vm537_vm12 = vmor %vm535_vm9, %vm536_vm7 }
 0x49d   :  { %v532_v0 = vsub.f32 1.0, %v531_v61 }
 0x49e   :  { %v518_v4 = vmul.f32 %v2014_v56, %v517_v1 }
 0x49f   :  { %v533_v2 = vmul.f32 %v2016_v60, %v532_v0 }
 0x4a0   :  { %v519_v6 = vadd.f32 %v2014_v56, %v518_v4 }
 0x4a1   :  { %v534_v5 = vadd.f32 %v2016_v60, %v533_v2 }
 0x4a2   :  { %v523_v12 = vsel %vm522_vm10, %v2014_v56, %v519_v6 }
 0x4a3   :  { %v538_v11 = vsel %vm537_vm12, %v2016_v60, %v534_v5  ;;  %v528_v20 = vsel %vm525_vm15, %v527_v16, %v523_v12 }
 0x4a4   :  { %v543_v18 = vsel %vm540_vm14, %v542_v14, %v538_v11  ;;  %v567_v32 = vsub.f32 1.0, %v528_v20  ;;  %v582_v36 = vmul.f32 %v579_v22, %v528_v20 }
 0x4a5   :  { %v568_v24 = vsub.f32 1.0, %v543_v18  ;;  %v583_v37 = vmul.f32 %v543_v18, %v382_v47 }
 0x4ea   :  { %v574_v21 = vpop.permute.xlu2 %573 }
 0x4eb   :  { %v578_v34 = vmul.f32 %v574_v21, %v568_v24 }
 0x4ec   :  { %v572_v33 = vpop.permute.xlu1 %571 }
 0x4ed   :  { %v577_v35 = vmul.f32 %v572_v33, %v567_v32  ;;  %v2538_v39 = vadd.f32 %v583_v37, %v578_v34 }
 0x4ef   :  { %v2536_v38 = vadd.f32 %v582_v36, %v577_v35 }
 0x4f1   :  { %v588_v40 = vrot.slane %v2536_v38, 1 }
 0x4f3   :  { %v589_v41 = vsel %vm383_vm13, %v2538_v39, %v588_v40 }
 0x4f4   :  { %590 = vrot.lane.b32.xlu0 %v589_v41, %s2207_s1 }
 0x566   :  { %v591_v45 = vpop.permute.xlu0 %590 }
 0x567   :  { %1919 = vmatmul.msk.f32.vlgmr.msra.gmra.mxu3 %vm123_vm11, %v591_v45  ;;  %1920 = vmatmul.msk.f32.vlgmr.msra.gmra.mxu1 %vm123_vm11, %v591_v45 }
 0x568   :  { %1921 = vmatmul.msk.f32.vlgmr.msrb.gmra.mxu2 %vm123_vm11, %v591_v45  ;;  %1046 = vmatpush.msra.mxu3 %v2361_v27 }
 0x569   :  { %1236 = vmatpush.msra.mxu1 %v2302_v13  ;;  %1256 = vmatpush.msrb.mxu2 %v2361_v27 }
 0x56a   :  { %1047 = vmatpush.msra.mxu3 %v2368_v28 }
 0x56b   :  { %1237 = vmatpush.msra.mxu1 %v2311_v15  ;;  %1257 = vmatpush.msrb.mxu2 %v2368_v28 }
 0x56c   :  { %1048 = vmatpush.msra.mxu3 %v2385_v30 }
 0x56d   :  { %1238 = vmatpush.msra.mxu1 %v2319_v17  ;;  %1258 = vmatpush.msrb.mxu2 %v2385_v30 }
 0x56e   :  { %1049 = vmatpush.msra.mxu3 %v2390_v31 }
 0x56f   :  { %1239 = vmatpush.msra.mxu1 %v2328_v19  ;;  %1259 = vmatpush.msrb.mxu2 %v2390_v31 }
 0x5e4   :  { %v631_v30 = vpop.f32.mrf.mxu1 }
 0x5e5   :  { %v632_v19 = vadd.f32 %v2452_v54, %v631_v30 }
 0x5e7   :  { %v704_v31 = vrot.slane %v632_v19, 6  ;;  %v705_v21 = vrot.slane %v632_v19, 7 }
 0x5ea   :  { %v611_v13 = vpop.f32.mrf.mxu3 }
 0x5eb   :  { %v612_v27 = vadd.f32 %v2433_v46, %v611_v13  ;;  %v651_v44 = vpop.f32.mrf.mxu2 }
 0x5ec   :  { %v652_v15 = vadd.f32 %v2445_v50, %v651_v44 }
 0x5ed   :  { %v655_v47 = vrot.slane %v612_v27, 6  ;;  %v656_v28 = vrot.slane %v612_v27, 7 }
 0x5ee   :  { %v753_v42 = vrot.slane %v652_v15, 6  ;;  %v754_v17 = vrot.slane %v652_v15, 7 }
 0x5ef   :  { %659 = vrot.lane.b32.xlu2 %v656_v28, %s2206_s30  ;;  %657 = vrot.lane.b32.xlu1 %v655_v47, %s2206_s30 }
 0x5f0   :  { %755 = vrot.lane.b32.xlu0 %v753_v42, %s2206_s30 }
 0x5f7   :  { %757 = vrot.lane.b32.xlu1 %v754_v17, %s2206_s30 }
 0x5ff   :  { %706 = vrot.lane.b32.xlu1 %v704_v31, %s2207_s1 }
 0x649   :  { %v660_v43 = vpop.permute.xlu2 %659 }
 0x64a   :  { %v664_v48 = vadd.f32 %v660_v43, %v2474_v3 }
 0x64c   :  { %v1923_v49 = vmul.f32 -1.442695, %v664_v48 }
 0x64e   :  { %2017 = vpow2.f32 %v1923_v49 }
 0x654   :  { %v2018_v23 = vpop.eup %2017 }
 0x655   :  { %v672_v51 = vadd.f32 1.0, %v2018_v23 }
 0x657   :  { %2019 = vrcp.f32 %v672_v51  ;;  %v699_v57 = vand.u32 2147483648, %v672_v51  ;;  %vm693_vm1 = vweird.f32 %v672_v51  ;;  %v697_v56 = vand.u32 2147483647, %v672_v51 }
 0x659   :  { %v700_v61 = vor.u32 1.1754944e-38, %v699_v57  ;;  %vm698_vm3 = vcmp.eq.f32.partialorder %v697_v56, 8.507059e+37  ;;  %v787_v56 = vrot.slane %v2536_v38, 7 }
 0x65d   :  { %v2020_v52 = vpop.eup %2019 }
 0x65e   :  { %v689_v25 = vmul.f32 %v2020_v52, %v672_v51  ;;  %vm694_vm0 = vweird.f32 %v2020_v52 }
 0x65f   :  { %vm695_vm2 = vmor %vm693_vm1, %vm694_vm0 }
 0x660   :  { %v690_v53 = vsub.f32 1.0, %v689_v25 }
 0x661   :  { %v658_v55 = vpop.permute.xlu1 %657 }
 0x662   :  { %v663_v26 = vadd.f32 %v658_v55, %v2469_v63  ;;  %v691_v29 = vmul.f32 %v2020_v52, %v690_v53  ;;  %v756_v16 = vpop.permute.xlu0 %755 }
 0x664   :  { %v1922_v58 = vmul.f32 -1.442695, %v663_v26  ;;  %v692_v59 = vadd.f32 %v2020_v52, %v691_v29 }
 0x666   :  { %2021 = vpow2.f32 %v1922_v58  ;;  %v696_v60 = vsel %vm695_vm2, %v2020_v52, %v692_v59 }
 0x667   :  { %v701_v62 = vsel %vm698_vm3, %v700_v61, %v696_v60 }
 0x669   :  { %v758_v0 = vpop.permute.xlu1 %757 }
 0x66a   :  { %v762_v1 = vmul.f32 %v758_v0, %v701_v62  ;;  %v788_v62 = vrot.slane %v2538_v39, 7  ;;  %v2594_v39 = vld [vmem:[%s2863_s6 + $0x58] sm:$0xff] }
 0x66c   :  { %v2022_v2 = vpop.eup %2021  ;;  %767 = vrot.lane.b32.xlu0 %v762_v1, %s2207_s1 }
 0x66d   :  { %v671_v4 = vadd.f32 1.0, %v2022_v2 }
 0x66f   :  { %2023 = vrcp.f32 %v671_v4  ;;  %v684_v8 = vand.u32 2147483648, %v671_v4  ;;  %v682_v10 = vand.u32 2147483647, %v671_v4  ;;  %vm678_vm5 = vweird.f32 %v671_v4 }
 0x671   :  { %v685_v12 = vor.u32 1.1754944e-38, %v684_v8  ;;  %vm683_vm7 = vcmp.eq.f32.partialorder %v682_v10, 8.507059e+37  ;;  %v707_v36 = vpop.permute.xlu1 %706 }
 0x672   :  { %v712_v40 = vadd.f32 %v707_v36, %v2469_v63 }
 0x674   :  { %v1924_v45 = vmul.f32 -1.442695, %v712_v40 }
 0x675   :  { %v2024_v5 = vpop.eup %2023 }
 0x676   :  { %v674_v6 = vmul.f32 %v2024_v5, %v671_v4  ;;  %vm679_vm4 = vweird.f32 %v2024_v5 }
 0x677   :  { %vm680_vm6 = vmor %vm678_vm5, %vm679_vm4 }
 0x678   :  { %v675_v7 = vsub.f32 1.0, %v674_v6 }
 0x67a   :  { %v676_v9 = vmul.f32 %v2024_v5, %v675_v7 }
 0x67c   :  { %v677_v11 = vadd.f32 %v2024_v5, %v676_v9 }
 0x67e   :  { %v681_v14 = vsel %vm680_vm6, %v2024_v5, %v677_v11 }
 0x67f   :  { %v686_v18 = vsel %vm683_vm7, %v685_v12, %v681_v14  ;;  %v2600_v12 = vld [vmem:[%s2863_s6 + $0x18] sm:$0xff] }
 0x680   :  { %v761_v20 = vmul.f32 %v756_v16, %v686_v18  ;;  %v2606_v14 = vld [vmem:[%s2863_s6 + $0x38] sm:$0xff]  ;;  %v2612_v16 = vld [vmem:[%s2863_s6 + $0x50] sm:$0xff] }
 0x681   :  { %v2618_v18 = vld [vmem:[%s2863_s6 + $0x10] sm:$0xff] }
 0x682   :  { %765 = vrot.lane.b32.xlu2 %v761_v20, %s2207_s1  ;;  %v2624_v20 = vld [vmem:[%s2863_s6 + $0x30] sm:$0xff] }
 0x68a   :  { %708 = vrot.lane.b32.xlu2 %v705_v21, %s2207_s1  ;;  %v2630_v21 = vld [vmem:[%s2863_s6 + $0x48] sm:$0xff] }
 0x6dc   :  { %v766_v22 = vpop.permute.xlu2 %765 }
 0x6dd   :  { %v771_v24 = vadd.f32 %v766_v22, %v2469_v63  ;;  %v2636_v22 = vld [vmem:[%s2863_s6 + $0x8] sm:$0xff] }
 0x6de   :  { %v768_v32 = vpop.permute.xlu0 %767 }
 0x6df   :  { %2025 = vtanh.f32 %v771_v24  ;;  %v772_v33 = vadd.f32 %v768_v32, %v2474_v3  ;;  %v2642_v24 = vld [vmem:[%s2863_s6 + $0x28] sm:$0xff]  ;;  %v2648_v32 = vld [vmem:[%s2863_s6 + $0x40] sm:$0xff] }
 0x6e1   :  { %2027 = vtanh.f32 %v772_v33  ;;  %v2654_v33 = vld [vmem:[%s2863_s6] sm:$0xff] }
 0x6e2   :  { %2029 = vpow2.f32 %v1924_v45 }
 0x6e4   :  { %v709_v37 = vpop.permute.xlu2 %708 }
 0x6e5   :  { %v2026_v34 = vpop.eup %2025  ;;  %v713_v41 = vadd.f32 %v709_v37, %v2474_v3 }
 0x6e6   :  { %779 = vrot.lane.b32.xlu0 %v2026_v34, %s2208_s5  ;;  %v2660_v34 = vld [vmem:[%s2863_s6 + $0x20] sm:$0xff] }
 0x6e7   :  { %v2028_v35 = vpop.eup %2027  ;;  %v1925_v13 = vmul.f32 -1.442695, %v713_v41 }
 0x6e8   :  { %781 = vrot.lane.b32.xlu1 %v2028_v35, %s2208_s5  ;;  %v2030_v27 = vpop.eup %2029 }
 0x6e9   :  { %2031 = vpow2.f32 %v1925_v13  ;;  %v720_v15 = vadd.f32 1.0, %v2030_v27 }
 0x6eb   :  { %2033 = vrcp.f32 %v720_v15  ;;  %v733_v23 = vand.u32 2147483648, %v720_v15  ;;  %vm727_vm9 = vweird.f32 %v720_v15  ;;  %v731_v51 = vand.u32 2147483647, %v720_v15 }
 0x6ed   :  { %v734_v26 = vor.u32 1.1754944e-38, %v733_v23  ;;  %vm732_vm0 = vcmp.eq.f32.partialorder %v731_v51, 8.507059e+37 }
 0x6ef   :  { %v2032_v44 = vpop.eup %2031 }
 0x6f0   :  { %v721_v47 = vadd.f32 1.0, %v2032_v44 }
 0x6f1   :  { %v2034_v28 = vpop.eup %2033 }
 0x6f2   :  { %2035 = vrcp.f32 %v721_v47  ;;  %v723_v17 = vmul.f32 %v2034_v28, %v720_v15  ;;  %vm728_vm8 = vweird.f32 %v2034_v28  ;;  %v748_v25 = vand.u32 2147483648, %v721_v47 }
 0x6f3   :  { %vm729_vm12 = vmor %vm727_vm9, %vm728_vm8  ;;  %vm742_vm14 = vweird.f32 %v721_v47  ;;  %v746_v55 = vand.u32 2147483647, %v721_v47 }
 0x6f4   :  { %v724_v19 = vsub.f32 1.0, %v723_v17  ;;  %v749_v58 = vor.u32 1.1754944e-38, %v748_v25 }
 0x6f5   :  { %vm747_vm1 = vcmp.eq.f32.partialorder %v746_v55, 8.507059e+37 }
 0x6f6   :  { %v725_v43 = vmul.f32 %v2034_v28, %v724_v19 }
 0x6f8   :  { %v2036_v42 = vpop.eup %2035  ;;  %v726_v49 = vadd.f32 %v2034_v28, %v725_v43 }
 0x6f9   :  { %v738_v30 = vmul.f32 %v2036_v42, %v721_v47  ;;  %vm743_vm10 = vweird.f32 %v2036_v42 }
 0x6fa   :  { %v730_v53 = vsel %vm729_vm12, %v2034_v28, %v726_v49  ;;  %vm744_vm15 = vmor %vm742_vm14, %vm743_vm10 }
 0x6fb   :  { %v739_v31 = vsub.f32 1.0, %v738_v30  ;;  %v735_v57 = vsel %vm732_vm0, %v734_v26, %v730_v53 }
 0x6fc   :  { %v775_v60 = vsub.f32 1.0, %v735_v57  ;;  %v791_v1 = vmul.f32 %v787_v56, %v735_v57 }
 0x6fd   :  { %v740_v48 = vmul.f32 %v2036_v42, %v739_v31 }
 0x6ff   :  { %v741_v52 = vadd.f32 %v2036_v42, %v740_v48 }
 0x701   :  { %v745_v29 = vsel %vm744_vm15, %v2036_v42, %v741_v52 }
 0x702   :  { %v750_v59 = vsel %vm747_vm1, %v749_v58, %v745_v29 }
 0x703   :  { %v776_v2 = vsub.f32 1.0, %v750_v59  ;;  %v792_v6 = vmul.f32 %v788_v62, %v750_v59 }
 0x758   :  { %v780_v61 = vpop.permute.xlu0 %779 }
 0x759   :  { %v785_v0 = vmul.f32 %v780_v61, %v775_v60 }
 0x75a   :  { %v782_v4 = vpop.permute.xlu1 %781 }
 0x75b   :  { %v2580_v5 = vadd.f32 %v791_v1, %v785_v0  ;;  %v786_v7 = vmul.f32 %v782_v4, %v776_v2 }
 0x75d   :  { %v2582_v8 = vadd.f32 %v792_v6, %v786_v7  ;;  %v797_v9 = vrot.slane %v2580_v5, 2 }
 0x75f   :  { %v798_v10 = vrot.slane %v2582_v8, 1 }
 0x761   :  { %v799_v38 = vsel %vm383_vm13, %v798_v10, %v797_v9 }
 0x762   :  { %800 = vrot.lane.b32.xlu2 %v799_v38, %s2207_s1 }
 0x7bc   :  { %v801_v11 = vpop.permute.xlu2 %800 }
 0x7bd   :  { %1926 = vmatmul.msk.f32.vlgmr.msrb.gmra.mxu3 %vm123_vm11, %v801_v11  ;;  %1927 = vmatmul.msk.f32.vlgmr.msrb.gmra.mxu0 %vm123_vm11, %v801_v11 }
 0x7be   :  { %1928 = vmatmul.msk.f32.vlgmr.msrb.gmra.mxu1 %vm123_vm11, %v801_v11  ;;  %1276 = vmatpush.msrb.mxu3 %v2594_v39 }
 0x7bf   :  { %1446 = vmatpush.msrb.mxu0 %v2600_v12  ;;  %1466 = vmatpush.msrb.mxu1 %v2606_v14 }
 0x7c0   :  { %1277 = vmatpush.msrb.mxu3 %v2612_v16 }
 0x7c1   :  { %1447 = vmatpush.msrb.mxu0 %v2618_v18  ;;  %1467 = vmatpush.msrb.mxu1 %v2624_v20 }
 0x7c2   :  { %1278 = vmatpush.msrb.mxu3 %v2630_v21 }
 0x7c3   :  { %1448 = vmatpush.msrb.mxu0 %v2636_v22  ;;  %1468 = vmatpush.msrb.mxu1 %v2642_v24 }
 0x7c4   :  { %1279 = vmatpush.msrb.mxu3 %v2648_v32 }
 0x7c5   :  { %1449 = vmatpush.msrb.mxu0 %v2654_v33  ;;  %1469 = vmatpush.msrb.mxu1 %v2660_v34 }
 0x83a   :  { %v841_v44 = vpop.f32.mrf.mxu0 }
 0x83b   :  { %v861_v35 = vpop.f32.mrf.mxu1  ;;  %v842_v15 = vadd.f32 %v2452_v54, %v841_v44 }
 0x83c   :  { %v862_v36 = vadd.f32 %v2445_v50, %v861_v35 }
 0x83d   :  { %v914_v47 = vrot.slane %v842_v15, 5  ;;  %v915_v10 = vrot.slane %v842_v15, 6 }
 0x83e   :  { %v963_v37 = vrot.slane %v862_v36, 5  ;;  %v964_v27 = vrot.slane %v862_v36, 6 }
 0x840   :  { %965 = vrot.lane.b32.xlu2 %v963_v37, %s2206_s30  ;;  %v821_v40 = vpop.f32.mrf.mxu3 }
 0x841   :  { %v822_v41 = vadd.f32 %v2433_v46, %v821_v40 }
 0x843   :  { %v865_v45 = vrot.slane %v822_v41, 5  ;;  %v866_v13 = vrot.slane %v822_v41, 6 }
 0x845   :  { %869 = vrot.lane.b32.xlu1 %v866_v13, %s2206_s30  ;;  %867 = vrot.lane.b32.xlu0 %v865_v45, %s2206_s30 }
 0x84d   :  { %967 = vrot.lane.b32.xlu0 %v964_v27, %s2206_s30 }
 0x855   :  { %916 = vrot.lane.b32.xlu0 %v914_v47, %s2207_s1 }
 0x89a   :  { %v966_v4 = vpop.permute.xlu2 %965 }
 0x8b7   :  { %v870_v50 = vpop.permute.xlu1 %869  ;;  %v868_v28 = vpop.permute.xlu0 %867 }
 0x8b8   :  { %v874_v42 = vadd.f32 %v870_v50, %v2474_v3  ;;  %v873_v46 = vadd.f32 %v868_v28, %v2469_v63 }
 0x8ba   :  { %v1930_v17 = vmul.f32 -1.442695, %v874_v42  ;;  %v1929_v30 = vmul.f32 -1.442695, %v873_v46 }
 0x8bc   :  { %2037 = vpow2.f32 %v1930_v17 }
 0x8bd   :  { %2039 = vpow2.f32 %v1929_v30 }
 0x8bf   :  { %v968_v1 = vpop.permute.xlu0 %967 }
 0x8c2   :  { %v2038_v19 = vpop.eup %2037 }
 0x8c3   :  { %v2040_v31 = vpop.eup %2039  ;;  %v882_v43 = vadd.f32 1.0, %v2038_v19 }
 0x8c4   :  { %v881_v48 = vadd.f32 1.0, %v2040_v31 }
 0x8c5   :  { %2041 = vrcp.f32 %v882_v43  ;;  %v909_v25 = vand.u32 2147483648, %v882_v43  ;;  %v907_v26 = vand.u32 2147483647, %v882_v43  ;;  %vm903_vm4 = vweird.f32 %v882_v43 }
 0x8c6   :  { %2043 = vrcp.f32 %v881_v48  ;;  %v894_v29 = vand.u32 2147483648, %v881_v48  ;;  %v892_v58 = vand.u32 2147483647, %v881_v48  ;;  %vm888_vm6 = vweird.f32 %v881_v48 }
 0x8c7   :  { %v910_v56 = vor.u32 1.1754944e-38, %v909_v25  ;;  %vm908_vm7 = vcmp.eq.f32.partialorder %v907_v26, 8.507059e+37  ;;  %v917_v45 = vpop.permute.xlu0 %916 }
 0x8c8   :  { %v895_v62 = vor.u32 1.1754944e-38, %v894_v29  ;;  %vm893_vm9 = vcmp.eq.f32.partialorder %v892_v58, 8.507059e+37  ;;  %v922_v27 = vadd.f32 %v917_v45, %v2469_v63 }
 0x8ca   :  { %v1931_v15 = vmul.f32 -1.442695, %v922_v27 }
 0x8cb   :  { %v2042_v54 = vpop.eup %2041 }
 0x8cc   :  { %v2044_v49 = vpop.eup %2043  ;;  %v899_v23 = vmul.f32 %v2042_v54, %v882_v43  ;;  %vm904_vm2 = vweird.f32 %v2042_v54 }
 0x8cd   :  { %v884_v51 = vmul.f32 %v2044_v49, %v881_v48  ;;  %vm889_vm3 = vweird.f32 %v2044_v49  ;;  %vm905_vm5 = vmor %vm903_vm4, %vm904_vm2 }
 0x8ce   :  { %v900_v52 = vsub.f32 1.0, %v899_v23  ;;  %vm890_vm8 = vmor %vm888_vm6, %vm889_vm3 }
 0x8cf   :  { %v885_v53 = vsub.f32 1.0, %v884_v51 }
 0x8d0   :  { %v901_v55 = vmul.f32 %v2042_v54, %v900_v52 }
 0x8d1   :  { %v886_v57 = vmul.f32 %v2044_v49, %v885_v53 }
 0x8d2   :  { %v902_v59 = vadd.f32 %v2042_v54, %v901_v55 }
 0x8d3   :  { %v887_v60 = vadd.f32 %v2044_v49, %v886_v57 }
 0x8d4   :  { %v906_v61 = vsel %vm905_vm5, %v2042_v54, %v902_v59 }
 0x8d5   :  { %v911_v0 = vsel %vm908_vm7, %v910_v56, %v906_v61  ;;  %v891_v2 = vsel %vm890_vm8, %v2044_v49, %v887_v60  ;;  %v998_v56 = vrot.slane %v2582_v8, 7  ;;  %v997_v61 = vrot.slane %v2580_v5, 7 }
 0x8d6   :  { %v972_v6 = vmul.f32 %v968_v1, %v911_v0  ;;  %v896_v7 = vsel %vm893_vm9, %v895_v62, %v891_v2 }
 0x8d7   :  { %v971_v9 = vmul.f32 %v966_v4, %v896_v7 }
 0x8d8   :  { %977 = vrot.lane.b32.xlu2 %v972_v6, %s2207_s1 }
 0x8d9   :  { %975 = vrot.lane.b32.xlu1 %v971_v9, %s2207_s1 }
 0x8e1   :  { %918 = vrot.lane.b32.xlu1 %v915_v10, %s2207_s1 }
 0x932   :  { %v978_v38 = vpop.permute.xlu2 %977 }
 0x933   :  { %v982_v11 = vadd.f32 %v978_v38, %v2474_v3 }
 0x935   :  { %2045 = vtanh.f32 %v982_v11 }
 0x93b   :  { %v2046_v35 = vpop.eup %2045 }
 0x93c   :  { %991 = vrot.lane.b32.xlu0 %v2046_v35, %s2208_s5 }
 0x94b   :  { %v976_v36 = vpop.permute.xlu1 %975 }
 0x94c   :  { %v981_v37 = vadd.f32 %v976_v36, %v2469_v63 }
 0x94e   :  { %2047 = vtanh.f32 %v981_v37 }
 0x953   :  { %v919_v41 = vpop.permute.xlu1 %918 }
 0x954   :  { %v2048_v40 = vpop.eup %2047  ;;  %v923_v13 = vadd.f32 %v919_v41, %v2474_v3 }
 0x955   :  { %989 = vrot.lane.b32.xlu2 %v2048_v40, %s2208_s5  ;;  %v2726_v40 = vld [vmem:[%s2864_s7 + $0x1] ss:$0 sm:$0xff] }
 0x956   :  { %v1932_v44 = vmul.f32 -1.442695, %v923_v13 }
 0x958   :  { %2049 = vpow2.f32 %v1932_v44 }
 0x959   :  { %2051 = vpow2.f32 %v1931_v15 }
 0x95e   :  { %v2050_v47 = vpop.eup %2049 }
 0x95f   :  { %v2052_v50 = vpop.eup %2051  ;;  %v931_v28 = vadd.f32 1.0, %v2050_v47 }
 0x960   :  { %v930_v42 = vadd.f32 1.0, %v2052_v50 }
 0x961   :  { %2053 = vrcp.f32 %v931_v28  ;;  %v958_v51 = vand.u32 2147483648, %v931_v28  ;;  %vm952_vm14 = vweird.f32 %v931_v28  ;;  %v956_v25 = vand.u32 2147483647, %v931_v28 }
 0x962   :  { %2055 = vrcp.f32 %v930_v42  ;;  %v943_v52 = vand.u32 2147483648, %v930_v42  ;;  %vm937_vm15 = vweird.f32 %v930_v42  ;;  %v941_v53 = vand.u32 2147483647, %v930_v42 }
 0x963   :  { %v959_v29 = vor.u32 1.1754944e-38, %v958_v51  ;;  %vm957_vm2 = vcmp.eq.f32.partialorder %v956_v25, 8.507059e+37 }
 0x964   :  { %v944_v57 = vor.u32 1.1754944e-38, %v943_v52  ;;  %vm942_vm3 = vcmp.eq.f32.partialorder %v941_v53, 8.507059e+37 }
 0x967   :  { %v2054_v46 = vpop.eup %2053 }
 0x968   :  { %v2056_v17 = vpop.eup %2055  ;;  %v948_v30 = vmul.f32 %v2054_v46, %v931_v28  ;;  %vm953_vm10 = vweird.f32 %v2054_v46 }
 0x969   :  { %v933_v19 = vmul.f32 %v2056_v17, %v930_v42  ;;  %vm938_vm12 = vweird.f32 %v2056_v17  ;;  %vm954_vm0 = vmor %vm952_vm14, %vm953_vm10 }
 0x96a   :  { %v949_v31 = vsub.f32 1.0, %v948_v30  ;;  %vm939_vm1 = vmor %vm937_vm15, %vm938_vm12 }
 0x96b   :  { %v934_v43 = vsub.f32 1.0, %v933_v19 }
 0x96c   :  { %v950_v48 = vmul.f32 %v2054_v46, %v949_v31 }
 0x96d   :  { %v935_v54 = vmul.f32 %v2056_v17, %v934_v43 }
 0x96e   :  { %v951_v49 = vadd.f32 %v2054_v46, %v950_v48 }
 0x96f   :  { %v936_v23 = vadd.f32 %v2056_v17, %v935_v54 }
 0x970   :  { %v955_v55 = vsel %vm954_vm0, %v2054_v46, %v951_v49 }
 0x971   :  { %v940_v26 = vsel %vm939_vm1, %v2056_v17, %v936_v23  ;;  %v960_v58 = vsel %vm957_vm2, %v959_v29, %v955_v55 }
 0x972   :  { %v945_v59 = vsel %vm942_vm3, %v944_v57, %v940_v26  ;;  %v986_v60 = vsub.f32 1.0, %v960_v58  ;;  %v1002_v2 = vmul.f32 %v998_v56, %v960_v58 }
 0x973   :  { %v985_v62 = vsub.f32 1.0, %v945_v59  ;;  %v1001_v7 = vmul.f32 %v997_v61, %v945_v59 }
 0x9ae   :  { %v992_v0 = vpop.permute.xlu0 %991 }
 0x9af   :  { %v990_v1 = vpop.permute.xlu2 %989  ;;  %v996_v4 = vmul.f32 %v992_v0, %v986_v60 }
 0x9b0   :  { %v995_v6 = vmul.f32 %v990_v1, %v985_v62 }
 0x9b1   :  { %v2684_v9 = vadd.f32 %v1002_v2, %v996_v4 }
 0x9b2   :  { %v2686_v10 = vadd.f32 %v1001_v7, %v995_v6 }
 0x9b3   :  { %v1008_v38 = vrot.slane %v2684_v9, 2 }
 0x9b4   :  { %v1007_v11 = vrot.slane %v2686_v10, 3 }
 0x9b6   :  { %v1009_v8 = vsel %vm383_vm13, %v1008_v38, %v1007_v11 }
 0x9b7   :  { %1010 = vrot.lane.b32.xlu1 %v1009_v8, %s2207_s1 }
 0xa29   :  { %v1011_v5 = vpop.permute.xlu1 %1010 }
 0xa2a   :  { %1933 = vmatmul.msk.f32.vlgmr.msra.gmra.mxu2 %vm123_vm11, %v1011_v5  ;;  %1934 = vmatmul.msk.f32.vlgmr.msra.gmra.mxu3 %vm123_vm11, %v1011_v5 }
 0xa2b   :  { %1935 = vmatmul.msk.f32.vlgmr.msra.gmra.mxu0 %vm123_vm11, %v1011_v5  ;;  %1486 = vmatpush.msra.mxu2 %v2594_v39 }
 0xa2c   :  { %1656 = vmatpush.msra.mxu3 %v2600_v12  ;;  %1676 = vmatpush.msra.mxu0 %v2606_v14  ;;  %v2710_v14 = vld [vmem:[%s2864_s7 + $0x2] ss:$0 sm:$0xff] }
 0xa2d   :  { %1487 = vmatpush.msra.mxu2 %v2612_v16 }
 0xa2e   :  { %1657 = vmatpush.msra.mxu3 %v2618_v18  ;;  %1677 = vmatpush.msra.mxu0 %v2624_v20 }
 0xa2f   :  { %1488 = vmatpush.msra.mxu2 %v2630_v21 }
 0xa30   :  { %1658 = vmatpush.msra.mxu3 %v2636_v22  ;;  %1678 = vmatpush.msra.mxu0 %v2642_v24  ;;  %v2717_v24 = vld [vmem:[%s2864_s7] ss:$0 sm:$0xff]  ;;  %s2209_s7 = smov [#allocation2]  }
 0xa31   :  { %1489 = vmatpush.msra.mxu2 %v2648_v32 }
 0xa32   :  { %1659 = vmatpush.msra.mxu3 %v2654_v33  ;;  %1679 = vmatpush.msra.mxu0 %v2660_v34 }
 0xaa8   :  { %v1071_v12 = vpop.f32.mrf.mxu0 }
 0xaa9   :  { %v1072_v18 = vadd.f32 %v2710_v14, %v1071_v12 }
 0xaab   :  { %v1173_v20 = vrot.slane %v1072_v18, 4  ;;  %v1174_v36 = vrot.slane %v1072_v18, 5 }
 0xaad   :  { %1175 = vrot.lane.b32.xlu1 %v1173_v20, %s2206_s30  ;;  %v1031_v22 = vpop.f32.mrf.mxu2  ;;  %v1051_v37 = vpop.f32.mrf.mxu3 }
 0xaae   :  { %v1032_v33 = vadd.f32 %v2717_v24, %v1031_v22  ;;  %v1052_v41 = vadd.f32 %v2726_v40, %v1051_v37 }
 0xab0   :  { %v1075_v34 = vrot.slane %v1032_v33, 4  ;;  %v1076_v35 = vrot.slane %v1032_v33, 5  ;;  %v1124_v45 = vrot.slane %v1052_v41, 4  ;;  %v1125_v55 = vrot.slane %v1052_v41, 5 }
 0xab2   :  { %1079 = vrot.lane.b32.xlu0 %v1076_v35, %s2206_s30  ;;  %1077 = vrot.lane.b32.xlu2 %v1075_v34, %s2206_s30 }
 0xaba   :  { %1177 = vrot.lane.b32.xlu2 %v1174_v36, %s2206_s30 }
 0xac2   :  { %1126 = vrot.lane.b32.xlu2 %v1124_v45, %s2207_s1 }
 0xb0c   :  { %v1078_v13 = vpop.permute.xlu2 %1077 }
 0xb0d   :  { %v1083_v27 = vadd.f32 %v1078_v13, %v2469_v63 }
 0xb0f   :  { %v1936_v44 = vmul.f32 -1.442695, %v1083_v27 }
 0xb11   :  { %2057 = vpow2.f32 %v1936_v44 }
 0xb14   :  { %v1178_v0 = vpop.permute.xlu2 %1177 }
 0xb17   :  { %v2058_v15 = vpop.eup %2057 }
 0xb18   :  { %v1091_v47 = vadd.f32 1.0, %v2058_v15 }
 0xb1a   :  { %2059 = vrcp.f32 %v1091_v47  ;;  %v1104_v46 = vand.u32 2147483648, %v1091_v47  ;;  %v1102_v19 = vand.u32 2147483647, %v1091_v47  ;;  %vm1098_vm5 = vweird.f32 %v1091_v47 }
 0xb1c   :  { %v1105_v54 = vor.u32 1.1754944e-38, %v1104_v46  ;;  %vm1103_vm7 = vcmp.eq.f32.partialorder %v1102_v19, 8.507059e+37  ;;  %v1127_v5 = vpop.permute.xlu2 %1126 }
 0xb1d   :  { %v1132_v18 = vadd.f32 %v1127_v5, %v2469_v63 }
 0xb1f   :  { %v1176_v23 = vpop.permute.xlu1 %1175  ;;  %v1938_v22 = vmul.f32 -1.442695, %v1132_v18 }
 0xb20   :  { %v2060_v50 = vpop.eup %2059 }
 0xb21   :  { %v1094_v28 = vmul.f32 %v2060_v50, %v1091_v47  ;;  %vm1099_vm4 = vweird.f32 %v2060_v50 }
 0xb22   :  { %vm1100_vm6 = vmor %vm1098_vm5, %vm1099_vm4 }
 0xb23   :  { %v1095_v42 = vsub.f32 1.0, %v1094_v28 }
 0xb24   :  { %v1080_v17 = vpop.permute.xlu0 %1079 }
 0xb25   :  { %v1096_v30 = vmul.f32 %v2060_v50, %v1095_v42  ;;  %v1084_v31 = vadd.f32 %v1080_v17, %v2474_v3 }
 0xb27   :  { %v1097_v43 = vadd.f32 %v2060_v50, %v1096_v30  ;;  %v1937_v48 = vmul.f32 -1.442695, %v1084_v31 }
 0xb29   :  { %v1101_v49 = vsel %vm1100_vm6, %v2060_v50, %v1097_v43  ;;  %2061 = vpow2.f32 %v1937_v48 }
 0xb2a   :  { %v1106_v51 = vsel %vm1103_vm7, %v1105_v54, %v1101_v49 }
 0xb2b   :  { %v1181_v52 = vmul.f32 %v1176_v23, %v1106_v51  ;;  %v1207_v51 = vrot.slane %v2686_v10, 7 }
 0xb2d   :  { %1185 = vrot.lane.b32.xlu0 %v1181_v52, %s2207_s1  ;;  %v1208_v52 = vrot.slane %v2684_v9, 7 }
 0xb2f   :  { %v2062_v25 = vpop.eup %2061 }
 0xb30   :  { %v1092_v53 = vadd.f32 1.0, %v2062_v25 }
 0xb32   :  { %2063 = vrcp.f32 %v1092_v53  ;;  %v1119_v58 = vand.u32 2147483648, %v1092_v53  ;;  %v1117_v56 = vand.u32 2147483647, %v1092_v53  ;;  %vm1113_vm9 = vweird.f32 %v1092_v53 }
 0xb34   :  { %v1120_v61 = vor.u32 1.1754944e-38, %v1119_v58  ;;  %vm1118_vm12 = vcmp.eq.f32.partialorder %v1117_v56, 8.507059e+37 }
 0xb35   :  { %1128 = vrot.lane.b32.xlu0 %v1125_v55, %s2207_s1 }
 0xb38   :  { %v2064_v26 = vpop.eup %2063 }
 0xb39   :  { %v1109_v29 = vmul.f32 %v2064_v26, %v1092_v53  ;;  %vm1114_vm8 = vweird.f32 %v2064_v26 }
 0xb3a   :  { %vm1115_vm10 = vmor %vm1113_vm9, %vm1114_vm8 }
 0xb3b   :  { %v1110_v57 = vsub.f32 1.0, %v1109_v29 }
 0xb3d   :  { %v1111_v59 = vmul.f32 %v2064_v26, %v1110_v57 }
 0xb3f   :  { %v1112_v60 = vadd.f32 %v2064_v26, %v1111_v59 }
 0xb41   :  { %v1116_v62 = vsel %vm1115_vm10, %v2064_v26, %v1112_v60 }
 0xb42   :  { %v1121_v1 = vsel %vm1118_vm12, %v1120_v61, %v1116_v62 }
 0xb43   :  { %v1182_v2 = vmul.f32 %v1178_v0, %v1121_v1 }
 0xb45   :  { %1187 = vrot.lane.b32.xlu1 %v1182_v2, %s2207_s1 }
 0xb9f   :  { %v1186_v4 = vpop.permute.xlu0 %1185 }
 0xba0   :  { %v1191_v6 = vadd.f32 %v1186_v4, %v2469_v63 }
 0xba2   :  { %2065 = vtanh.f32 %v1191_v6 }
 0xba7   :  { %v1129_v12 = vpop.permute.xlu0 %1128 }
 0xba8   :  { %v2066_v7 = vpop.eup %2065  ;;  %v1133_v20 = vadd.f32 %v1129_v12, %v2474_v3 }
 0xba9   :  { %1199 = vrot.lane.b32.xlu1 %v2066_v7, %s2208_s5 }
 0xbaa   :  { %v1939_v33 = vmul.f32 -1.442695, %v1133_v20 }
 0xbb7   :  { %v1188_v38 = vpop.permute.xlu1 %1187 }
 0xbb8   :  { %v1192_v11 = vadd.f32 %v1188_v38, %v2474_v3 }
 0xbba   :  { %2067 = vtanh.f32 %v1192_v11 }
 0xbbb   :  { %2069 = vpow2.f32 %v1938_v22 }
 0xbbc   :  { %2071 = vpow2.f32 %v1939_v33 }
 0xbc0   :  { %v2068_v8 = vpop.eup %2067 }
 0xbc1   :  { %1201 = vrot.lane.b32.xlu2 %v2068_v8, %s2208_s5  ;;  %v2070_v34 = vpop.eup %2069 }
 0xbc2   :  { %v2072_v35 = vpop.eup %2071  ;;  %v1140_v36 = vadd.f32 1.0, %v2070_v34 }
 0xbc3   :  { %v1141_v37 = vadd.f32 1.0, %v2072_v35 }
 0xbc4   :  { %2073 = vrcp.f32 %v1140_v36  ;;  %vm1147_vm0 = vweird.f32 %v1140_v36  ;;  %v1153_v46 = vand.u32 2147483648, %v1140_v36  ;;  %v1151_v30 = vand.u32 2147483647, %v1140_v36 }
 0xbc5   :  { %2075 = vrcp.f32 %v1141_v37  ;;  %v1168_v17 = vand.u32 2147483648, %v1141_v37  ;;  %vm1162_vm2 = vweird.f32 %v1141_v37  ;;  %v1166_v19 = vand.u32 2147483647, %v1141_v37 }
 0xbc6   :  { %v1154_v48 = vor.u32 1.1754944e-38, %v1153_v46  ;;  %vm1152_vm4 = vcmp.eq.f32.partialorder %v1151_v30, 8.507059e+37 }
 0xbc7   :  { %v1169_v54 = vor.u32 1.1754944e-38, %v1168_v17  ;;  %vm1167_vm5 = vcmp.eq.f32.partialorder %v1166_v19, 8.507059e+37 }
 0xbca   :  { %v2074_v41 = vpop.eup %2073 }
 0xbcb   :  { %v2076_v45 = vpop.eup %2075  ;;  %v1143_v13 = vmul.f32 %v2074_v41, %v1140_v36  ;;  %vm1148_vm14 = vweird.f32 %v2074_v41 }
 0xbcc   :  { %v1158_v27 = vmul.f32 %v2076_v45, %v1141_v37  ;;  %vm1163_vm15 = vweird.f32 %v2076_v45  ;;  %vm1149_vm1 = vmor %vm1147_vm0, %vm1148_vm14 }
 0xbcd   :  { %v1144_v44 = vsub.f32 1.0, %v1143_v13  ;;  %vm1164_vm3 = vmor %vm1162_vm2, %vm1163_vm15 }
 0xbce   :  { %v1159_v15 = vsub.f32 1.0, %v1158_v27 }
 0xbcf   :  { %v1145_v47 = vmul.f32 %v2074_v41, %v1144_v44 }
 0xbd0   :  { %v1160_v50 = vmul.f32 %v2076_v45, %v1159_v15 }
 0xbd1   :  { %v1146_v28 = vadd.f32 %v2074_v41, %v1145_v47 }
 0xbd2   :  { %v1161_v42 = vadd.f32 %v2076_v45, %v1160_v50 }
 0xbd3   :  { %v1150_v31 = vsel %vm1149_vm1, %v2074_v41, %v1146_v28 }
 0xbd4   :  { %v1165_v43 = vsel %vm1164_vm3, %v2076_v45, %v1161_v42  ;;  %v1155_v49 = vsel %vm1152_vm4, %v1154_v48, %v1150_v31 }
 0xbd5   :  { %v1170_v23 = vsel %vm1167_vm5, %v1169_v54, %v1165_v43  ;;  %v1195_v25 = vsub.f32 1.0, %v1155_v49  ;;  %v1211_v57 = vmul.f32 %v1207_v51, %v1155_v49 }
 0xbd6   :  { %v1196_v53 = vsub.f32 1.0, %v1170_v23  ;;  %v1212_v58 = vmul.f32 %v1208_v52, %v1170_v23 }
 0xc1b   :  { %v1200_v55 = vpop.permute.xlu1 %1199  ;;  %v1202_v26 = vpop.permute.xlu2 %1201 }
 0xc1c   :  { %v1205_v29 = vmul.f32 %v1200_v55, %v1195_v25  ;;  %v1206_v59 = vmul.f32 %v1202_v26, %v1196_v53 }
 0xc1e   :  { %v2743_v56 = vadd.f32 %v1211_v57, %v1205_v29  ;;  %v2745_v60 = vadd.f32 %v1212_v58, %v1206_v59 }
 0xc20   :  { %v1217_v61 = vrot.slane %v2743_v56, 4  ;;  %v1218_v62 = vrot.slane %v2745_v60, 3 }
 0xc22   :  { %v1219_v10 = vsel %vm383_vm13, %v1218_v62, %v1217_v61 }
 0xc23   :  { %1220 = vrot.lane.b32.xlu0 %v1219_v10, %s2207_s1 }
 0xc95   :  { %v1221_v9 = vpop.permute.xlu0 %1220 }
 0xc96   :  { %1940 = vmatmul.msk.f32.vlgmr.msra.gmra.mxu1 %vm123_vm11, %v1221_v9  ;;  %1941 = vmatmul.msk.f32.vlgmr.msrb.gmra.mxu2 %vm123_vm11, %v1221_v9 }
 0xc97   :  { %1942 = vmatmul.msk.f32.vlgmr.msrb.gmra.mxu3 %vm123_vm11, %v1221_v9  ;;  %1696 = vmatpush.msra.mxu1 %v2594_v39 }
 0xc99   :  { %1697 = vmatpush.msra.mxu1 %v2612_v16 }
 0xc9b   :  { %1698 = vmatpush.msra.mxu1 %v2630_v21 }
 0xc9d   :  { %1699 = vmatpush.msra.mxu1 %v2648_v32 }
 0xd13   :  { %v1241_v0 = vpop.f32.mrf.mxu1 }
 0xd14   :  { %v1242_v1 = vadd.f32 %v2717_v24, %v1241_v0 }
 0xd16   :  { %v1285_v2 = vrot.slane %v1242_v1, 3  ;;  %v1286_v4 = vrot.slane %v1242_v1, 4 }
 0xd18   :  { %1289 = vrot.lane.b32.xlu2 %v1286_v4, %s2206_s30  ;;  %1287 = vrot.lane.b32.xlu1 %v1285_v2, %s2206_s30 }
 0xd19   :  { %v1261_v11 = vpop.f32.mrf.mxu2 }
 0xd1a   :  { %v1281_v6 = vpop.f32.mrf.mxu3  ;;  %v1262_v16 = vadd.f32 %v2726_v40, %v1261_v11 }
 0xd1b   :  { %v1282_v7 = vadd.f32 %v2710_v14, %v1281_v6 }
 0xd1c   :  { %v1334_v21 = vrot.slane %v1262_v16, 3  ;;  %v1335_v25 = vrot.slane %v1262_v16, 4 }
 0xd1d   :  { %v1383_v38 = vrot.slane %v1282_v7, 3  ;;  %v1384_v39 = vrot.slane %v1282_v7, 4 }
 0xd1f   :  { %1385 = vrot.lane.b32.xlu0 %v1383_v38, %s2206_s30 }
 0xd20   :  { %1387 = vrot.lane.b32.xlu1 %v1384_v39, %s2206_s30 }
 0xd28   :  { %1336 = vrot.lane.b32.xlu1 %v1334_v21, %s2207_s1 }
 0xd72   :  { %v1290_v32 = vpop.permute.xlu2 %1289 }
 0xd73   :  { %v1294_v8 = vadd.f32 %v1290_v32, %v2474_v3 }
 0xd75   :  { %v1944_v5 = vmul.f32 -1.442695, %v1294_v8 }
 0xd77   :  { %2077 = vpow2.f32 %v1944_v5 }
 0xd7d   :  { %v2078_v12 = vpop.eup %2077 }
 0xd7e   :  { %v1302_v18 = vadd.f32 1.0, %v2078_v12 }
 0xd80   :  { %2079 = vrcp.f32 %v1302_v18  ;;  %v1329_v37 = vand.u32 2147483648, %v1302_v18  ;;  %vm1323_vm7 = vweird.f32 %v1302_v18  ;;  %v1327_v13 = vand.u32 2147483647, %v1302_v18 }
 0xd82   :  { %v1330_v44 = vor.u32 1.1754944e-38, %v1329_v37  ;;  %vm1328_vm9 = vcmp.eq.f32.partialorder %v1327_v13, 8.507059e+37  ;;  %v1417_v13 = vrot.slane %v2743_v56, 7 }
 0xd86   :  { %v2080_v20 = vpop.eup %2079 }
 0xd87   :  { %v1319_v22 = vmul.f32 %v2080_v20, %v1302_v18  ;;  %vm1324_vm6 = vweird.f32 %v2080_v20 }
 0xd88   :  { %vm1325_vm8 = vmor %vm1323_vm7, %vm1324_vm6 }
 0xd89   :  { %v1320_v33 = vsub.f32 1.0, %v1319_v22 }
 0xd8a   :  { %v1288_v34 = vpop.permute.xlu1 %1287 }
 0xd8b   :  { %v1293_v35 = vadd.f32 %v1288_v34, %v2469_v63  ;;  %v1321_v36 = vmul.f32 %v2080_v20, %v1320_v33 }
 0xd8d   :  { %v1943_v41 = vmul.f32 -1.442695, %v1293_v35  ;;  %v1322_v45 = vadd.f32 %v2080_v20, %v1321_v36 }
 0xd8f   :  { %2081 = vpow2.f32 %v1943_v41  ;;  %v1326_v27 = vsel %vm1325_vm8, %v2080_v20, %v1322_v45 }
 0xd90   :  { %v1331_v15 = vsel %vm1328_vm9, %v1330_v44, %v1326_v27 }
 0xd91   :  { %v1386_v23 = vpop.permute.xlu0 %1385 }
 0xd92   :  { %v1388_v47 = vpop.permute.xlu1 %1387 }
 0xd93   :  { %v1392_v50 = vmul.f32 %v1388_v47, %v1331_v15  ;;  %v1418_v15 = vrot.slane %v2745_v60, 7 }
 0xd95   :  { %v2082_v28 = vpop.eup %2081  ;;  %1397 = vrot.lane.b32.xlu0 %v1392_v50, %s2207_s1 }
 0xd96   :  { %v1301_v42 = vadd.f32 1.0, %v2082_v28 }
 0xd98   :  { %2083 = vrcp.f32 %v1301_v42  ;;  %v1314_v19 = vand.u32 2147483648, %v1301_v42  ;;  %v1312_v43 = vand.u32 2147483647, %v1301_v42  ;;  %vm1308_vm12 = vweird.f32 %v1301_v42 }
 0xd9a   :  { %v1315_v54 = vor.u32 1.1754944e-38, %v1314_v19  ;;  %vm1313_vm15 = vcmp.eq.f32.partialorder %v1312_v43, 8.507059e+37  ;;  %v1337_v59 = vpop.permute.xlu1 %1336 }
 0xd9b   :  { %v1342_v62 = vadd.f32 %v1337_v59, %v2469_v63 }
 0xd9d   :  { %v1945_v9 = vmul.f32 -1.442695, %v1342_v62 }
 0xd9e   :  { %v2084_v46 = vpop.eup %2083 }
 0xd9f   :  { %v1304_v17 = vmul.f32 %v2084_v46, %v1301_v42  ;;  %vm1309_vm10 = vweird.f32 %v2084_v46 }
 0xda0   :  { %vm1310_vm14 = vmor %vm1308_vm12, %vm1309_vm10 }
 0xda1   :  { %v1305_v30 = vsub.f32 1.0, %v1304_v17 }
 0xda3   :  { %v1306_v31 = vmul.f32 %v2084_v46, %v1305_v30 }
 0xda5   :  { %v1307_v48 = vadd.f32 %v2084_v46, %v1306_v31 }
 0xda7   :  { %v1311_v49 = vsel %vm1310_vm14, %v2084_v46, %v1307_v48 }
 0xda8   :  { %v1316_v51 = vsel %vm1313_vm15, %v1315_v54, %v1311_v49 }
 0xda9   :  { %v1391_v52 = vmul.f32 %v1386_v23, %v1316_v51 }
 0xdab   :  { %1395 = vrot.lane.b32.xlu2 %v1391_v52, %s2207_s1 }
 0xdb3   :  { %1338 = vrot.lane.b32.xlu2 %v1335_v25, %s2207_s1 }
 0xe05   :  { %v1396_v53 = vpop.permute.xlu2 %1395 }
 0xe06   :  { %v1401_v55 = vadd.f32 %v1396_v53, %v2469_v63 }
 0xe07   :  { %v1398_v26 = vpop.permute.xlu0 %1397 }
 0xe08   :  { %2085 = vtanh.f32 %v1401_v55  ;;  %v1402_v29 = vadd.f32 %v1398_v26, %v2474_v3 }
 0xe0a   :  { %2087 = vtanh.f32 %v1402_v29 }
 0xe0b   :  { %2089 = vpow2.f32 %v1945_v9 }
 0xe0d   :  { %v1339_v61 = vpop.permute.xlu2 %1338 }
 0xe0e   :  { %v2086_v57 = vpop.eup %2085  ;;  %v1343_v10 = vadd.f32 %v1339_v61, %v2474_v3 }
 0xe0f   :  { %1409 = vrot.lane.b32.xlu0 %v2086_v57, %s2208_s5 }
 0xe10   :  { %v2088_v58 = vpop.eup %2087  ;;  %v1946_v0 = vmul.f32 -1.442695, %v1343_v10 }
 0xe11   :  { %1411 = vrot.lane.b32.xlu1 %v2088_v58, %s2208_s5  ;;  %v2090_v1 = vpop.eup %2089 }
 0xe12   :  { %2091 = vpow2.f32 %v1946_v0  ;;  %v1350_v4 = vadd.f32 1.0, %v2090_v1 }
 0xe14   :  { %2093 = vrcp.f32 %v1350_v4  ;;  %v1363_v12 = vand.u32 2147483648, %v1350_v4  ;;  %vm1357_vm1 = vweird.f32 %v1350_v4  ;;  %v1361_v18 = vand.u32 2147483647, %v1350_v4 }
 0xe16   :  { %v1364_v35 = vor.u32 1.1754944e-38, %v1363_v12  ;;  %vm1362_vm6 = vcmp.eq.f32.partialorder %v1361_v18, 8.507059e+37 }
 0xe18   :  { %v2092_v2 = vpop.eup %2091 }
 0xe19   :  { %v1351_v6 = vadd.f32 1.0, %v2092_v2 }
 0xe1a   :  { %v2094_v7 = vpop.eup %2093 }
 0xe1b   :  { %2095 = vrcp.f32 %v1351_v6  ;;  %v1353_v39 = vmul.f32 %v2094_v7, %v1350_v4  ;;  %vm1358_vm0 = vweird.f32 %v2094_v7  ;;  %v1378_v22 = vand.u32 2147483648, %v1351_v6 }
 0xe1c   :  { %vm1359_vm3 = vmor %vm1357_vm1, %vm1358_vm0  ;;  %vm1372_vm4 = vweird.f32 %v1351_v6  ;;  %v1376_v34 = vand.u32 2147483647, %v1351_v6 }
 0xe1d   :  { %v1354_v16 = vsub.f32 1.0, %v1353_v39  ;;  %v1379_v41 = vor.u32 1.1754944e-38, %v1378_v22 }
 0xe1e   :  { %vm1377_vm7 = vcmp.eq.f32.partialorder %v1376_v34, 8.507059e+37 }
 0xe1f   :  { %v1355_v32 = vmul.f32 %v2094_v7, %v1354_v16 }
 0xe21   :  { %v2096_v38 = vpop.eup %2095  ;;  %v1356_v5 = vadd.f32 %v2094_v7, %v1355_v32 }
 0xe22   :  { %v1368_v11 = vmul.f32 %v2096_v38, %v1351_v6  ;;  %vm1373_vm2 = vweird.f32 %v2096_v38 }
 0xe23   :  { %v1360_v33 = vsel %vm1359_vm3, %v2094_v7, %v1356_v5  ;;  %vm1374_vm5 = vmor %vm1372_vm4, %vm1373_vm2 }
 0xe24   :  { %v1369_v21 = vsub.f32 1.0, %v1368_v11  ;;  %v1365_v37 = vsel %vm1362_vm6, %v1364_v35, %v1360_v33 }
 0xe25   :  { %v1405_v27 = vsub.f32 1.0, %v1365_v37  ;;  %v1421_v50 = vmul.f32 %v1417_v13, %v1365_v37 }
 0xe26   :  { %v1370_v8 = vmul.f32 %v2096_v38, %v1369_v21 }
 0xe28   :  { %v1371_v20 = vadd.f32 %v2096_v38, %v1370_v8 }
 0xe2a   :  { %v1375_v36 = vsel %vm1374_vm5, %v2096_v38, %v1371_v20 }
 0xe2b   :  { %v1380_v45 = vsel %vm1377_vm7, %v1379_v41, %v1375_v36 }
 0xe2c   :  { %v1406_v28 = vsub.f32 1.0, %v1380_v45  ;;  %v1422_v17 = vmul.f32 %v1418_v15, %v1380_v45 }
 0xe81   :  { %v1410_v44 = vpop.permute.xlu0 %1409 }
 0xe82   :  { %v1415_v47 = vmul.f32 %v1410_v44, %v1405_v27 }
 0xe83   :  { %v1412_v42 = vpop.permute.xlu1 %1411 }
 0xe84   :  { %v2779_v46 = vadd.f32 %v1421_v50, %v1415_v47  ;;  %v1416_v30 = vmul.f32 %v1412_v42, %v1406_v28 }
 0xe86   :  { %v2781_v19 = vadd.f32 %v1422_v17, %v1416_v30  ;;  %v1427_v31 = vrot.slane %v2779_v46, 5 }
 0xe88   :  { %v1428_v43 = vrot.slane %v2781_v19, 4 }
 0xe8a   :  { %v1429_v56 = vsel %vm383_vm13, %v1428_v43, %v1427_v31 }
 0xe8b   :  { %1430 = vrot.lane.b32.xlu2 %v1429_v56, %s2207_s1 }
 0xee5   :  { %v1431_v48 = vpop.permute.xlu2 %1430 }
 0xee6   :  { %1947 = vmatmul.msk.f32.vlgmr.msrb.gmra.mxu0 %vm123_vm11, %v1431_v48  ;;  %1948 = vmatmul.msk.f32.vlgmr.msrb.gmra.mxu1 %vm123_vm11, %v1431_v48 }
 0xee7   :  { %1949 = vmatmul.msk.f32.vlgmr.msra.gmra.mxu2 %vm123_vm11, %v1431_v48 }
 0xf63   :  { %v1451_v60 = vpop.f32.mrf.mxu0  ;;  %v1471_v55 = vpop.f32.mrf.mxu1 }
 0xf64   :  { %v1452_v54 = vadd.f32 %v2717_v24, %v1451_v60  ;;  %v1472_v26 = vadd.f32 %v2726_v40, %v1471_v55 }
 0xf66   :  { %v1495_v49 = vrot.slane %v1452_v54, 2  ;;  %v1496_v23 = vrot.slane %v1452_v54, 3  ;;  %v1544_v29 = vrot.slane %v1472_v26, 2  ;;  %v1545_v44 = vrot.slane %v1472_v26, 3 }
 0xf68   :  { %1499 = vrot.lane.b32.xlu1 %v1496_v23, %s2206_s30  ;;  %1497 = vrot.lane.b32.xlu0 %v1495_v49, %s2206_s30 }
 0xf6a   :  { %v1491_v51 = vpop.f32.mrf.mxu2 }
 0xf6b   :  { %v1492_v52 = vadd.f32 %v2710_v14, %v1491_v51 }
 0xf6d   :  { %v1593_v25 = vrot.slane %v1492_v52, 2  ;;  %v1594_v53 = vrot.slane %v1492_v52, 3 }
 0xf6f   :  { %1595 = vrot.lane.b32.xlu2 %v1593_v25, %s2206_s30 }
 0xf70   :  { %1597 = vrot.lane.b32.xlu0 %v1594_v53, %s2206_s30 }
 0xf78   :  { %1546 = vrot.lane.b32.xlu0 %v1544_v29, %s2207_s1 }
 0xfc9   :  { %v1596_v41 = vpop.permute.xlu2 %1595 }
 0xfda   :  { %v1500_v57 = vpop.permute.xlu1 %1499  ;;  %v1498_v58 = vpop.permute.xlu0 %1497 }
 0xfdb   :  { %v1504_v59 = vadd.f32 %v1500_v57, %v2474_v3  ;;  %v1503_v61 = vadd.f32 %v1498_v58, %v2469_v63 }
 0xfdd   :  { %v1951_v62 = vmul.f32 -1.442695, %v1504_v59  ;;  %v1950_v10 = vmul.f32 -1.442695, %v1503_v61 }
 0xfdf   :  { %2097 = vpow2.f32 %v1951_v62 }
 0xfe0   :  { %2099 = vpow2.f32 %v1950_v10 }
 0xfe2   :  { %v1598_v36 = vpop.permute.xlu0 %1597 }
 0xfe5   :  { %v2098_v9 = vpop.eup %2097 }
 0xfe6   :  { %v2100_v0 = vpop.eup %2099  ;;  %v1512_v1 = vadd.f32 1.0, %v2098_v9 }
 0xfe7   :  { %v1511_v2 = vadd.f32 1.0, %v2100_v0 }
 0xfe8   :  { %2101 = vrcp.f32 %v1512_v1  ;;  %v1539_v11 = vand.u32 2147483648, %v1512_v1  ;;  %v1537_v32 = vand.u32 2147483647, %v1512_v1  ;;  %vm1533_vm10 = vweird.f32 %v1512_v1 }
 0xfe9   :  { %2103 = vrcp.f32 %v1511_v2  ;;  %v1524_v8 = vand.u32 2147483648, %v1511_v2  ;;  %v1522_v12 = vand.u32 2147483647, %v1511_v2  ;;  %vm1518_vm14 = vweird.f32 %v1511_v2 }
 0xfea   :  { %v1540_v20 = vor.u32 1.1754944e-38, %v1539_v11  ;;  %vm1538_vm15 = vcmp.eq.f32.partialorder %v1537_v32, 8.507059e+37  ;;  %v1547_v31 = vpop.permute.xlu0 %1546 }
 0xfeb   :  { %v1525_v34 = vor.u32 1.1754944e-38, %v1524_v8  ;;  %vm1523_vm1 = vcmp.eq.f32.partialorder %v1522_v12, 8.507059e+37  ;;  %v1552_v56 = vadd.f32 %v1547_v31, %v2469_v63 }
 0xfed   :  { %v1952_v60 = vmul.f32 -1.442695, %v1552_v56 }
 0xfee   :  { %v2102_v4 = vpop.eup %2101 }
 0xfef   :  { %v2104_v6 = vpop.eup %2103  ;;  %v1529_v7 = vmul.f32 %v2102_v4, %v1512_v1  ;;  %vm1534_vm8 = vweird.f32 %v2102_v4 }
 0xff0   :  { %v1514_v38 = vmul.f32 %v2104_v6, %v1511_v2  ;;  %vm1519_vm9 = vweird.f32 %v2104_v6  ;;  %vm1535_vm12 = vmor %vm1533_vm10, %vm1534_vm8 }
 0xff1   :  { %v1530_v39 = vsub.f32 1.0, %v1529_v7  ;;  %vm1520_vm0 = vmor %vm1518_vm14, %vm1519_vm9 }
 0xff2   :  { %v1515_v16 = vsub.f32 1.0, %v1514_v38 }
 0xff3   :  { %v1531_v21 = vmul.f32 %v2102_v4, %v1530_v39  ;;  %v1628_v39 = vrot.slane %v2781_v19, 7 }
 0xff4   :  { %v1516_v5 = vmul.f32 %v2104_v6, %v1515_v16  ;;  %v1627_v16 = vrot.slane %v2779_v46, 7 }
 0xff5   :  { %v1532_v18 = vadd.f32 %v2102_v4, %v1531_v21 }
 0xff6   :  { %v1517_v22 = vadd.f32 %v2104_v6, %v1516_v5 }
 0xff7   :  { %v1536_v33 = vsel %vm1535_vm12, %v2102_v4, %v1532_v18 }
 0xff8   :  { %v1541_v35 = vsel %vm1538_vm15, %v1540_v20, %v1536_v33  ;;  %v1521_v37 = vsel %vm1520_vm0, %v2104_v6, %v1517_v22 }
 0xff9   :  { %v1602_v45 = vmul.f32 %v1598_v36, %v1541_v35  ;;  %v1526_v13 = vsel %vm1523_vm1, %v1525_v34, %v1521_v37 }
 0xffa   :  { %v1601_v27 = vmul.f32 %v1596_v41, %v1526_v13 }
 0xffb   :  { %1607 = vrot.lane.b32.xlu2 %v1602_v45, %s2207_s1 }
 0xffc   :  { %1605 = vrot.lane.b32.xlu1 %v1601_v27, %s2207_s1 }
0x1004   :  { %1548 = vrot.lane.b32.xlu1 %v1545_v44, %s2207_s1 }
0x1055   :  { %v1608_v15 = vpop.permute.xlu2 %1607 }
0x1056   :  { %v1612_v47 = vadd.f32 %v1608_v15, %v2474_v3 }
0x1058   :  { %2105 = vtanh.f32 %v1612_v47 }
0x105e   :  { %v2106_v50 = vpop.eup %2105 }
0x105f   :  { %1621 = vrot.lane.b32.xlu0 %v2106_v50, %s2208_s5 }
0x106e   :  { %v1606_v28 = vpop.permute.xlu1 %1605 }
0x106f   :  { %v1611_v42 = vadd.f32 %v1606_v28, %v2469_v63 }
0x1071   :  { %2107 = vtanh.f32 %v1611_v42 }
0x1076   :  { %v1549_v30 = vpop.permute.xlu1 %1548 }
0x1077   :  { %v2108_v17 = vpop.eup %2107  ;;  %v1553_v43 = vadd.f32 %v1549_v30, %v2474_v3 }
0x1078   :  { %1619 = vrot.lane.b32.xlu2 %v2108_v17, %s2208_s5 }
0x1079   :  { %v1953_v48 = vmul.f32 -1.442695, %v1553_v43 }
0x107b   :  { %2109 = vpow2.f32 %v1953_v48 }
0x107c   :  { %2111 = vpow2.f32 %v1952_v60 }
0x1081   :  { %v2110_v54 = vpop.eup %2109 }
0x1082   :  { %v2112_v49 = vpop.eup %2111  ;;  %v1561_v23 = vadd.f32 1.0, %v2110_v54 }
0x1083   :  { %v1560_v51 = vadd.f32 1.0, %v2112_v49 }
0x1084   :  { %2113 = vrcp.f32 %v1561_v23  ;;  %v1588_v62 = vand.u32 2147483648, %v1561_v23  ;;  %vm1582_vm4 = vweird.f32 %v1561_v23  ;;  %v1586_v9 = vand.u32 2147483647, %v1561_v23 }
0x1085   :  { %2115 = vrcp.f32 %v1560_v51  ;;  %v1573_v10 = vand.u32 2147483648, %v1560_v51  ;;  %vm1567_vm5 = vweird.f32 %v1560_v51  ;;  %v1571_v0 = vand.u32 2147483647, %v1560_v51 }
0x1086   :  { %v1589_v4 = vor.u32 1.1754944e-38, %v1588_v62  ;;  %vm1587_vm8 = vcmp.eq.f32.partialorder %v1586_v9, 8.507059e+37 }
0x1087   :  { %v1574_v6 = vor.u32 1.1754944e-38, %v1573_v10  ;;  %vm1572_vm9 = vcmp.eq.f32.partialorder %v1571_v0, 8.507059e+37 }
0x108a   :  { %v2114_v52 = vpop.eup %2113 }
0x108b   :  { %v2116_v25 = vpop.eup %2115  ;;  %v1578_v53 = vmul.f32 %v2114_v52, %v1561_v23  ;;  %vm1583_vm2 = vweird.f32 %v2114_v52 }
0x108c   :  { %v1563_v55 = vmul.f32 %v2116_v25, %v1560_v51  ;;  %vm1568_vm3 = vweird.f32 %v2116_v25  ;;  %vm1584_vm6 = vmor %vm1582_vm4, %vm1583_vm2 }
0x108d   :  { %v1579_v26 = vsub.f32 1.0, %v1578_v53  ;;  %vm1569_vm7 = vmor %vm1567_vm5, %vm1568_vm3 }
0x108e   :  { %v1564_v29 = vsub.f32 1.0, %v1563_v55 }
0x108f   :  { %v1580_v57 = vmul.f32 %v2114_v52, %v1579_v26 }
0x1090   :  { %v1565_v58 = vmul.f32 %v2116_v25, %v1564_v29 }
0x1091   :  { %v1581_v59 = vadd.f32 %v2114_v52, %v1580_v57 }
0x1092   :  { %v1566_v61 = vadd.f32 %v2116_v25, %v1565_v58 }
0x1093   :  { %v1585_v1 = vsel %vm1584_vm6, %v2114_v52, %v1581_v59 }
0x1094   :  { %v1570_v2 = vsel %vm1569_vm7, %v2116_v25, %v1566_v61  ;;  %v1590_v7 = vsel %vm1587_vm8, %v1589_v4, %v1585_v1 }
0x1095   :  { %v1575_v38 = vsel %vm1572_vm9, %v1574_v6, %v1570_v2  ;;  %v1616_v11 = vsub.f32 1.0, %v1590_v7  ;;  %v1632_v5 = vmul.f32 %v1628_v39, %v1590_v7 }
0x1096   :  { %v1615_v21 = vsub.f32 1.0, %v1575_v38  ;;  %v1631_v20 = vmul.f32 %v1627_v16, %v1575_v38 }
0x10d1   :  { %v1622_v32 = vpop.permute.xlu0 %1621 }
0x10d2   :  { %v1620_v8 = vpop.permute.xlu2 %1619  ;;  %v1626_v12 = vmul.f32 %v1622_v32, %v1616_v11 }
0x10d3   :  { %v1625_v18 = vmul.f32 %v1620_v8, %v1615_v21 }
0x10d4   :  { %v2811_v22 = vadd.f32 %v1632_v5, %v1626_v12 }
0x10d5   :  { %v2813_v33 = vadd.f32 %v1631_v20, %v1625_v18 }
0x10d6   :  { %v1638_v34 = vrot.slane %v2811_v22, 5 }
0x10d7   :  { %v1637_v35 = vrot.slane %v2813_v33, 6 }
0x10d9   :  { %v1639_v19 = vsel %vm383_vm13, %v1638_v34, %v1637_v35 }
0x10da   :  { %1640 = vrot.lane.b32.xlu1 %v1639_v19, %s2207_s1 }
0x114c   :  { %v1641_v46 = vpop.permute.xlu1 %1640 }
0x114d   :  { %1954 = vmatmul.msk.f32.vlgmr.msra.gmra.mxu3 %vm123_vm11, %v1641_v46  ;;  %1955 = vmatmul.msk.f32.vlgmr.msra.gmra.mxu0 %vm123_vm11, %v1641_v46 }
0x114e   :  { %1956 = vmatmul.msk.f32.vlgmr.msra.gmra.mxu1 %vm123_vm11, %v1641_v46 }
0x11ca   :  { %v1681_v47 = vpop.f32.mrf.mxu0 }
0x11cb   :  { %v1701_v36 = vpop.f32.mrf.mxu1  ;;  %v1682_v50 = vadd.f32 %v2726_v40, %v1681_v47 }
0x11cc   :  { %v1702_v37 = vadd.f32 %v2710_v14, %v1701_v36 }
0x11cd   :  { %v1755_v28 = vrot.slane %v1682_v50, 2  ;;  %v1754_v58 = vrot.slane %v1682_v50, 1 }
0x11ce   :  { %v1804_v41 = vrot.slane %v1702_v37, 2  ;;  %v1803_v15 = vrot.slane %v1702_v37, 1 }
0x11d0   :  { %1807 = vrot.lane.b32.xlu1 %v1804_v41, %s2206_s30  ;;  %v1661_v45 = vpop.f32.mrf.mxu3 }
0x11d1   :  { %v1662_v13 = vadd.f32 %v2717_v24, %v1661_v45 }
0x11d3   :  { %v1705_v27 = vrot.slane %v1662_v13, 1  ;;  %v1706_v44 = vrot.slane %v1662_v13, 2 }
0x11d5   :  { %1709 = vrot.lane.b32.xlu2 %v1706_v44, %s2206_s30  ;;  %1707 = vrot.lane.b32.xlu0 %v1705_v27, %s2206_s30 }
0x11dd   :  { %1805 = vrot.lane.b32.xlu2 %v1803_v15, %s2206_s30  ;;  %s1862_s30 = sshll.u32 %s2209_s7, 4  ;;  %s1863_s30 = int_to_ptr.vmem [resolvable:$true] %s1862_s30 }
0x11de   :  { %1870 = dma.vmem_to_hbm [thread:$0]  %s1863_s30, 256, %s1865_s18, [#allocation3], %s2210_s19, %s2210_s19, %s2211_s20  }
0x11e5   :  { %1758 = vrot.lane.b32.xlu2 %v1755_v28, %s2207_s1 }
0x122f   :  { %v1710_v14 = vpop.permute.xlu2 %1709 }
0x1230   :  { %v1714_v42 = vadd.f32 %v1710_v14, %v2474_v3 }
0x1232   :  { %v1958_v17 = vmul.f32 -1.442695, %v1714_v42 }
0x1234   :  { %2117 = vpow2.f32 %v1958_v17 }
0x1237   :  { %v1806_v6 = vpop.permute.xlu2 %1805 }
0x123a   :  { %v2118_v24 = vpop.eup %2117 }
0x123b   :  { %v1722_v30 = vadd.f32 1.0, %v2118_v24 }
0x123d   :  { %2119 = vrcp.f32 %v1722_v30  ;;  %v1749_v48 = vand.u32 2147483648, %v1722_v30  ;;  %v1747_v49 = vand.u32 2147483647, %v1722_v30  ;;  %vm1743_vm13 = vweird.f32 %v1722_v30 }
0x123f   :  { %v1750_v52 = vor.u32 1.1754944e-38, %v1749_v48  ;;  %vm1748_vm12 = vcmp.eq.f32.partialorder %v1747_v49, 8.507059e+37  ;;  %v1759_v5 = vpop.permute.xlu2 %1758  ;;  %v1838_v49 = vrot.slane %v2811_v22, 7 }
0x1240   :  { %v1763_v18 = vadd.f32 %v1759_v5, %v2474_v3 }
0x1242   :  { %v1808_v53 = vpop.permute.xlu1 %1807  ;;  %v1960_v34 = vmul.f32 -1.442695, %v1763_v18 }
0x1243   :  { %v2120_v31 = vpop.eup %2119 }
0x1244   :  { %v1739_v43 = vmul.f32 %v2120_v31, %v1722_v30  ;;  %vm1744_vm11 = vweird.f32 %v2120_v31 }
0x1245   :  { %vm1745_vm10 = vmor %vm1743_vm13, %vm1744_vm11  ;;  %vm1854_vm11 = vcmask 261127   ;;  %vm1856_vm13 = vcmask 253952  }
0x1246   :  { %v1740_v56 = vsub.f32 1.0, %v1739_v43 }
0x1247   :  { %v1708_v60 = vpop.permute.xlu0 %1707 }
0x1248   :  { %v1741_v54 = vmul.f32 %v2120_v31, %v1740_v56  ;;  %v1713_v40 = vadd.f32 %v1708_v60, %v2469_v63 }
0x124a   :  { %v1742_v23 = vadd.f32 %v2120_v31, %v1741_v54  ;;  %v1957_v51 = vmul.f32 -1.442695, %v1713_v40  ;;  %v1837_v54 = vrot.slane %v2813_v33, 7 }
0x124c   :  { %v1746_v25 = vsel %vm1745_vm10, %v2120_v31, %v1742_v23  ;;  %2121 = vpow2.f32 %v1957_v51 }
0x124d   :  { %v1751_v55 = vsel %vm1748_vm12, %v1750_v52, %v1746_v25 }
0x124e   :  { %v1812_v26 = vmul.f32 %v1808_v53, %v1751_v55 }
0x1250   :  { %1817 = vrot.lane.b32.xlu0 %v1812_v26, %s2207_s1 }
0x1252   :  { %v2122_v29 = vpop.eup %2121 }
0x1253   :  { %v1721_v57 = vadd.f32 1.0, %v2122_v29 }
0x1255   :  { %2123 = vrcp.f32 %v1721_v57  ;;  %v1734_v10 = vand.u32 2147483648, %v1721_v57  ;;  %v1732_v0 = vand.u32 2147483647, %v1721_v57  ;;  %vm1728_vm15 = vweird.f32 %v1721_v57 }
0x1257   :  { %v1735_v2 = vor.u32 1.1754944e-38, %v1734_v10  ;;  %vm1733_vm1 = vcmp.eq.f32.partialorder %v1732_v0, 8.507059e+37 }
0x1258   :  { %1756 = vrot.lane.b32.xlu0 %v1754_v58, %s2207_s1 }
0x125b   :  { %v2124_v59 = vpop.eup %2123 }
0x125c   :  { %v1724_v61 = vmul.f32 %v2124_v59, %v1721_v57  ;;  %vm1729_vm14 = vweird.f32 %v2124_v59 }
0x125d   :  { %vm1730_vm0 = vmor %vm1728_vm15, %vm1729_vm14 }
0x125e   :  { %v1725_v62 = vsub.f32 1.0, %v1724_v61 }
0x1260   :  { %v1726_v9 = vmul.f32 %v2124_v59, %v1725_v62 }
0x1262   :  { %v1727_v1 = vadd.f32 %v2124_v59, %v1726_v9 }
0x1264   :  { %v1731_v4 = vsel %vm1730_vm0, %v2124_v59, %v1727_v1 }
0x1265   :  { %v1736_v7 = vsel %vm1733_vm1, %v1735_v2, %v1731_v4 }
0x1266   :  { %v1811_v38 = vmul.f32 %v1806_v6, %v1736_v7 }
0x1268   :  { %1815 = vrot.lane.b32.xlu1 %v1811_v38, %s2207_s1 }
0x12c2   :  { %v1818_v39 = vpop.permute.xlu0 %1817 }
0x12c3   :  { %v1822_v11 = vadd.f32 %v1818_v39, %v2474_v3 }
0x12c5   :  { %2125 = vtanh.f32 %v1822_v11 }
0x12ca   :  { %v1757_v12 = vpop.permute.xlu0 %1756 }
0x12cb   :  { %v2126_v16 = vpop.eup %2125  ;;  %v1762_v20 = vadd.f32 %v1757_v12, %v2469_v63 }
0x12cc   :  { %1831 = vrot.lane.b32.xlu1 %v2126_v16, %s2208_s5 }
0x12cd   :  { %v1959_v35 = vmul.f32 -1.442695, %v1762_v20 }
0x12da   :  { %v1816_v21 = vpop.permute.xlu1 %1815 }
0x12db   :  { %v1821_v32 = vadd.f32 %v1816_v21, %v2469_v63 }
0x12dd   :  { %2127 = vtanh.f32 %v1821_v32 }
0x12de   :  { %2129 = vpow2.f32 %v1960_v34 }
0x12df   :  { %2131 = vpow2.f32 %v1959_v35 }
0x12e3   :  { %v2128_v8 = vpop.eup %2127 }
0x12e4   :  { %1829 = vrot.lane.b32.xlu2 %v2128_v8, %s2208_s5  ;;  %v2130_v19 = vpop.eup %2129 }
0x12e5   :  { %v2132_v46 = vpop.eup %2131  ;;  %v1771_v36 = vadd.f32 1.0, %v2130_v19 }
0x12e6   :  { %v1770_v37 = vadd.f32 1.0, %v2132_v46 }
0x12e7   :  { %2133 = vrcp.f32 %v1771_v36  ;;  %vm1792_vm4 = vweird.f32 %v1771_v36  ;;  %v1798_v14 = vand.u32 2147483648, %v1771_v36  ;;  %v1796_v24 = vand.u32 2147483647, %v1771_v36 }
0x12e8   :  { %2135 = vrcp.f32 %v1770_v37  ;;  %v1783_v28 = vand.u32 2147483648, %v1770_v37  ;;  %vm1777_vm5 = vweird.f32 %v1770_v37  ;;  %v1781_v42 = vand.u32 2147483647, %v1770_v37 }
0x12e9   :  { %v1799_v56 = vor.u32 1.1754944e-38, %v1798_v14  ;;  %vm1797_vm9 = vcmp.eq.f32.partialorder %v1796_v24, 8.507059e+37 }
0x12ea   :  { %v1784_v43 = vor.u32 1.1754944e-38, %v1783_v28  ;;  %vm1782_vm8 = vcmp.eq.f32.partialorder %v1781_v42, 8.507059e+37 }
0x12ed   :  { %v2134_v41 = vpop.eup %2133 }
0x12ee   :  { %v2136_v45 = vpop.eup %2135  ;;  %v1788_v27 = vmul.f32 %v2134_v41, %v1771_v36  ;;  %vm1793_vm2 = vweird.f32 %v2134_v41 }
0x12ef   :  { %v1773_v13 = vmul.f32 %v2136_v45, %v1770_v37  ;;  %vm1778_vm3 = vweird.f32 %v2136_v45  ;;  %vm2841_vm6 = vmor %vm1792_vm4, %vm1793_vm2 }
0x12f0   :  { %v1789_v15 = vsub.f32 1.0, %v1788_v27  ;;  %vm1779_vm7 = vmor %vm1777_vm5, %vm1778_vm3 }
0x12f1   :  { %v1774_v44 = vsub.f32 1.0, %v1773_v13 }
0x12f2   :  { %v1790_v3 = vmul.f32 %v2134_v41, %v1789_v15 }
0x12f3   :  { %v1775_v47 = vmul.f32 %v2136_v45, %v1774_v44 }
0x12f4   :  { %v1791_v50 = vadd.f32 %v2134_v41, %v1790_v3 }
0x12f5   :  { %v1776_v63 = vadd.f32 %v2136_v45, %v1775_v47 }
0x12f6   :  { %v1795_v31 = vsel %vm2841_vm6, %v2134_v41, %v1791_v50 }
0x12f7   :  { %v1780_v30 = vsel %vm1779_vm7, %v2136_v45, %v1776_v63  ;;  %v1800_v60 = vsel %vm1797_vm9, %v1799_v56, %v1795_v31 }
0x12f8   :  { %v1785_v48 = vsel %vm1782_vm8, %v1784_v43, %v1780_v30  ;;  %v1826_v23 = vsub.f32 1.0, %v1800_v60  ;;  %v1842_v55 = vmul.f32 %v1838_v49, %v1800_v60 }
0x12f9   :  { %v1825_v40 = vsub.f32 1.0, %v1785_v48  ;;  %v1841_v53 = vmul.f32 %v1837_v54, %v1785_v48 }
0x133e   :  { %v1830_v51 = vpop.permute.xlu2 %1829  ;;  %v1832_v52 = vpop.permute.xlu1 %1831 }
0x133f   :  { %v1835_v25 = vmul.f32 %v1830_v51, %v1825_v40  ;;  %v1836_v26 = vmul.f32 %v1832_v52, %v1826_v23 }
0x1341   :  { %v1843_v29 = vadd.f32 %v1841_v53, %v1835_v25  ;;  %v1844_v57 = vadd.f32 %v1842_v55, %v1836_v26 }
0x1343   :  { %v1847_v58 = vrot.slane %v1844_v57, 7  ;;  %1848 = vrot.lane.b32.xlu0 %v1843_v29, %s2207_s1 }
0x1345   :  { %1850 = vrot.lane.b32.xlu1 %v1847_v58, %s2207_s1 }
0x13b5   :  { %v1849_v22 = vpop.permute.xlu0 %1848 }
0x13b6   :  { %1855 = vst.msk [vmem:[#allocation4 - $0x7] sm:$0x80] %vm1854_vm11, %v1849_v22 }
0x13b7   :  { %v1851_v33 = vpop.permute.xlu1 %1850 }
0x13b8   :  { %1857 = vst.msk [vmem:[#allocation4 + $0x1] sm:$0x1] %vm1856_vm13, %v1851_v33 }
0x13b9   :  { %1881 = dma.vmem_to_hbm [thread:$0]  %s1877_s21, 32, %s1879_s24, [#allocation5]  }
0x13ba   :  { %2200 = dma.done.wait [#allocation3], 256  }
0x13bb   :  { %2201 = vsyncadd [#allocation3], 4294967040 }
0x13bc   :  { %2202 = dma.done.wait [#allocation5], 32  }
0x13bd   :  { %2203 = vsyncadd [#allocation5], 4294967264 }
0x13be   :  { %1890 = vsyncpa [#allocation3], 1 }
0x13bf   :  { %1891 = vsyncpa [#allocation5], 1 }

</bundles_post_ra>
